<compile_context>
chip_gen: v7x
topology: tpu7x:2x2x1
jax: 0.10.0
libtpu: 0.0.40
codegen_flags: <defaults>
</compile_context>

<pallas_src>
import jax
import jax.numpy as jnp
import numpy as np
from jax import lax
from jax.experimental import pallas as pl
from jax.experimental.pallas import tpu as pltpu

PAD = 0  # Constants.PAD


# --------------------------------------------------------------------------
# Fused Pallas kernel: wavefronted stacked LSTM + dense + log-softmax
# --------------------------------------------------------------------------
def make_chargen_kernel(num_layers, seq_len, hidden_dim, vocab_length):
    L, T, H, V = num_layers, seq_len, hidden_dim, vocab_length

    def kernel(x_ref, h0_ref, c0_ref, wih0_ref, bias_ref, wfused_ref,
               dense_w_ref, dense_b_ref, dist_ref, hT_ref, cT_ref):
        # --- Hoisted, time-batched layer-0 input projection (one MXU pass) --
        pre_x = (jnp.dot(x_ref[...], wih0_ref[...],
                         preferred_element_type=jnp.float32)
                 + bias_ref[0:1, :])                        # [T, 4H] f32

        w_fused = wfused_ref[...]                           # [L*H, L*4H] bf16

        # Per-layer recurrent state kept in vregs (no VMEM round-trips).
        h = [h0_ref[l:l + 1, :] for l in range(L)]          # each [1, H] f32
        c = [c0_ref[l:l + 1, :] for l in range(L)]

        # --- Wavefront: tick s runs layer l at timestep t = s - l -----------
        for s in range(T + L - 1):
            lhs = h[0] if L == 1 else jnp.concatenate(h, axis=1)   # [1, L*H]
            # One block-diagonal MXU push gives every layer's recurrent +
            # inter-layer input contribution for this tick.
            rec = jnp.dot(lhs.astype(jnp.bfloat16), w_fused,
                          preferred_element_type=jnp.float32)      # [1, L*4H]

            new_h, new_c = list(h), list(c)
            for l in range(L):
                t = s - l
                if not (0 <= t < T):
                    continue                      # layer inactive this tick
                if l == 0:
                    pre = pre_x[t:t + 1, :] + rec[:, 0:4 * H]
                else:
                    pre = (rec[:, l * 4 * H:(l + 1) * 4 * H]
                           + bias_ref[l:l + 1, :])
                # Two full-vreg EUP pushes, then slice i/f/g/o (gate order
                # i, f, g, o).
                sig = jax.nn.sigmoid(pre)                   # [1, 4H]
                tnh = jnp.tanh(pre)                         # [1, 4H]
                i_g = sig[:, 0 * H:1 * H]
                f_g = sig[:, 1 * H:2 * H]
                g_g = tnh[:, 2 * H:3 * H]
                o_g = sig[:, 3 * H:4 * H]
                c_new = f_g * c[l] + i_g * g_g
                new_c[l] = c_new
                new_h[l] = o_g * jnp.tanh(c_new)
            h, c = new_h, new_c

        for l in range(L):
            hT_ref[l:l + 1, :] = h[l]
            cT_ref[l:l + 1, :] = c[l]

        # --- Final dense + numerically-stable log-softmax --------------------
        logits = (jnp.dot(h[L - 1].astype(jnp.bfloat16), dense_w_ref[...],
                          preferred_element_type=jnp.float32)
                  + dense_b_ref[...])                       # [1, Vp] f32
        col = lax.broadcasted_iota(jnp.int32, logits.shape, 1)
        logits = jnp.where(col < V, logits, -jnp.inf)
        m = jnp.max(logits, axis=-1, keepdims=True)
        z = jnp.exp(logits - m)
        lse = jnp.log(jnp.sum(z, axis=-1, keepdims=True)) + m
        dist_ref[...] = logits - lse

    return kernel


# --------------------------------------------------------------------------
# pallas_call wrapper (single fused call)
# --------------------------------------------------------------------------
def chargen_call(x_seq, h0, c0, wih0, bias_all, w_fused, dense_w, dense_b,
                 vocab_length):
    T = x_seq.shape[0]
    L, H = h0.shape
    Vp = dense_w.shape[-1]

    kernel = make_chargen_kernel(L, T, H, vocab_length)

    def full2d(shape):
        return pl.BlockSpec(shape, lambda i: (0, 0))

    args = [x_seq, h0, c0, wih0, bias_all, w_fused, dense_w, dense_b]
    in_specs = [full2d(a.shape) for a in args]

    out_shape = (
        jax.ShapeDtypeStruct((1, Vp), jnp.float32),   # dist (padded vocab)
        jax.ShapeDtypeStruct((L, H), jnp.float32),    # final h per layer
        jax.ShapeDtypeStruct((L, H), jnp.float32),    # final c per layer
    )
    out_specs = (full2d((1, Vp)), full2d((L, H)), full2d((L, H)))

    return pl.pallas_call(
        kernel,
        out_shape=out_shape,
        grid=(1,),
        in_specs=in_specs,
        out_specs=out_specs,
        compiler_params=pltpu.CompilerParams(
            dimension_semantics=("arbitrary",)),
    )(*args)


# --------------------------------------------------------------------------
# CharGen model (parameters + forward)
# --------------------------------------------------------------------------
def init_chargen_params(key, vocab_length, char_embed_dim, hidden_dim, layers):
    Vp = ((vocab_length + 127) // 128) * 128   # lane-dense padded vocab
    H, L = hidden_dim, layers
    keys = jax.random.split(key, 1 + 3 * layers + 2)
    k = iter(keys)

    # nn.Embedding(vocab, E), init.normal_(0, 0.2), padding_idx=PAD row = 0
    embed_w = 0.2 * jax.random.normal(next(k), (vocab_length, char_embed_dim),
                                      jnp.float32)
    embed_w = embed_w.at[PAD].set(0.0)

    lstm_params = []
    in_dim = char_embed_dim
    s = 1.0 / np.sqrt(H)
    for _ in range(L):
        # Fused gate layout: [in, 4H] / [H, 4H] / [1, 4H], gate order i,f,g,o.
        wih = jax.random.uniform(next(k), (in_dim, 4 * H), jnp.float32, -s, s)
        whh = jax.random.uniform(next(k), (H, 4 * H), jnp.float32, -s, s)
        b = jax.random.uniform(next(k), (1, 4 * H), jnp.float32, -s, s)
        lstm_params.append((wih, whh, b))
        in_dim = H

    # LogSoftmaxDense(hidden_dim, vocab); columns zero-padded to Vp.
    dense_w = jax.random.uniform(next(k), (H, vocab_length), jnp.float32, -s, s)
    dense_b = jax.random.uniform(next(k), (1, vocab_length), jnp.float32, -s, s)
    dense_w_p = jnp.pad(dense_w, ((0, 0), (0, Vp - vocab_length)))
    dense_b_p = jnp.pad(dense_b, ((0, 0), (0, Vp - vocab_length)))

    # ---- kernel-side fused / bf16 parameters -------------------------------
    # Block-diagonal wavefront weight: rows l*H:(l+1)*H hold whh_l in the
    # layer-l gate columns and wih_{l+1} in the layer-(l+1) gate columns.
    w_fused = jnp.zeros((L * H, L * 4 * H), jnp.float32)
    for l in range(L):
        w_fused = w_fused.at[l * H:(l + 1) * H,
                             l * 4 * H:(l + 1) * 4 * H].set(lstm_params[l][1])
        if l + 1 < L:
            w_fused = w_fused.at[l * H:(l + 1) * H,
                                 (l + 1) * 4 * H:(l + 2) * 4 * H].set(
                                     lstm_params[l + 1][0])
    bias_all = jnp.concatenate([b for (_, _, b) in lstm_params], axis=0)

    return dict(
        embed=embed_w,
        lstm=lstm_params,                       # f32 originals (reference)
        dense_w=dense_w_p, dense_b=dense_b_p,   # f32 originals (reference)
        vocab=vocab_length,
        # kernel-side (bf16 MXU operands, f32 biases)
        wih0_k=lstm_params[0][0].astype(jnp.bfloat16),
        wfused_k=w_fused.astype(jnp.bfloat16),
        bias_k=bias_all,
        dense_w_k=dense_w_p.astype(jnp.bfloat16),
        dense_b_k=dense_b_p,
    )


def chargen_forward(params, tokens, h_init=None, c_init=None):
    """Mirror of CharGen.forward (generation path).

    tokens: int32 [T].  Returns (dist[V], h_hist list of [H], c_hist list of [H]).
    """
    L = len(params["lstm"])
    H = params["lstm"][0][1].shape[0]
    V = params["vocab"]

    h0 = (jnp.zeros((L, H), jnp.float32) if h_init is None
          else jnp.stack(h_init, axis=0))
    c0 = (jnp.zeros((L, H), jnp.float32) if c_init is None
          else jnp.stack(c_init, axis=0))

    # Embedding lookup (glue, plain JAX gather): [T] -> [T, E]; bf16 MXU input.
    x = jnp.take(params["embed"], tokens, axis=0).astype(jnp.bfloat16)

    dist_p, hT, cT = chargen_call(
        x, h0, c0, params["wih0_k"], params["bias_k"], params["wfused_k"],
        params["dense_w_k"], params["dense_b_k"], V)
    dist = dist_p[0, :V]
    h_hist = [hT[l] for l in range(L)]
    c_hist = [cT[l] for l in range(L)]
    return dist, h_hist, c_hist


# --------------------------------------------------------------------------
# Pure-JAX f32 reference (for correctness check)
# --------------------------------------------------------------------------
def chargen_forward_ref(params, tokens):
    H = params["lstm"][0][1].shape[0]
    V = params["vocab"]
    x = jnp.take(params["embed"], tokens, axis=0)
    h_hist, c_hist = [], []
    for (wih, whh, b) in params["lstm"]:
        def step(carry, x_t, wih=wih, whh=whh, b=b):
            h, c = carry
            pre = x_t @ wih + h @ whh + b[0]
            i_g = jax.nn.sigmoid(pre[0 * H:1 * H])
            f_g = jax.nn.sigmoid(pre[1 * H:2 * H])
            g_g = jnp.tanh(pre[2 * H:3 * H])
            o_g = jax.nn.sigmoid(pre[3 * H:4 * H])
            c_new = f_g * c + i_g * g_g
            h_new = o_g * jnp.tanh(c_new)
            return (h_new, c_new), h_new

        (hT, cT), hseq = lax.scan(step, (jnp.zeros((H,)), jnp.zeros((H,))), x)
        h_hist.append(hT)
        c_hist.append(cT)
        x = hseq
    logits = h_hist[-1] @ params["dense_w"][:, :V] + params["dense_b"][0, :V]
    dist = logits - jax.scipy.special.logsumexp(logits)
    return dist, h_hist, c_hist


# --------------------------------------------------------------------------
if __name__ == "__main__":
    # Small synthetic config
    vocab_length = 48
    char_embed_dim = 16
    hidden_dim = 32          # -> 4H = 128 gate lanes; L*4H = 256 fused lanes
    layers = 2
    seq_len = 8

    key = jax.random.PRNGKey(0)
    k_params, k_tokens = jax.random.split(key)
    params = init_chargen_params(k_params, vocab_length, char_embed_dim,
                                 hidden_dim, layers)
    tokens = jax.random.randint(k_tokens, (seq_len,), 0, vocab_length,
                                dtype=jnp.int32)

    dist, h_hist, c_hist = chargen_forward(params, tokens)
    dist = jax.block_until_ready(dist)
    h_hist = [jax.block_until_ready(h) for h in h_hist]
    c_hist = [jax.block_until_ready(c) for c in c_hist]

    # Correctness check against a pure-JAX f32 reference (bf16 MXU operands in
    # the kernel -> loosened tolerance).
    dist_r, h_hist_r, c_hist_r = chargen_forward_ref(params, tokens)
    np.testing.assert_allclose(np.asarray(dist), np.asarray(dist_r),
                               atol=3e-2, rtol=3e-2)
    for a, b in zip(h_hist, h_hist_r):
        np.testing.assert_allclose(np.asarray(a), np.asarray(b),
                                   atol=3e-2, rtol=3e-2)
    for a, b in zip(c_hist, c_hist_r):
        np.testing.assert_allclose(np.asarray(a), np.asarray(b),
                                   atol=3e-2, rtol=3e-2)

    # log-softmax output must be <= 0 (as asserted in the PyTorch module)
    assert (np.asarray(dist) <= 1e-6).all()

    print("KERNEL_OK")
</pallas_src>

<mosaic_0001>
module attributes {stable_mosaic.version = 11 : i64} {
  func.func @kernel(%arg0: i32, %arg1: memref<8x16xbf16, #tpu.memory_space<vmem>>, %arg2: memref<2x32xf32, #tpu.memory_space<vmem>>, %arg3: memref<2x32xf32, #tpu.memory_space<vmem>>, %arg4: memref<16x128xbf16, #tpu.memory_space<vmem>>, %arg5: memref<2x128xf32, #tpu.memory_space<vmem>>, %arg6: memref<64x256xbf16, #tpu.memory_space<vmem>>, %arg7: memref<32x128xbf16, #tpu.memory_space<vmem>>, %arg8: memref<1x128xf32, #tpu.memory_space<vmem>>, %arg9: memref<1x128xf32, #tpu.memory_space<vmem>>, %arg10: memref<2x32xf32, #tpu.memory_space<vmem>>, %arg11: memref<2x32xf32, #tpu.memory_space<vmem>>) attributes {dimension_semantics = [#tpu.dimension_semantics<arbitrary>], iteration_bounds = array<i64: 1>, scalar_prefetch = 0 : i64, scratch_operands = 0 : i64, tpu.core_type = #tpu.core_type<tc>, window_params = [{pipeline_mode = #tpu.pipeline_mode<synchronous>, transform_indices = @transform_0, window_bounds = array<i64: 8, 16>}, {pipeline_mode = #tpu.pipeline_mode<synchronous>, transform_indices = @transform_1, window_bounds = array<i64: 2, 32>}, {pipeline_mode = #tpu.pipeline_mode<synchronous>, transform_indices = @transform_2, window_bounds = array<i64: 2, 32>}, {pipeline_mode = #tpu.pipeline_mode<synchronous>, transform_indices = @transform_3, window_bounds = array<i64: 16, 128>}, {pipeline_mode = #tpu.pipeline_mode<synchronous>, transform_indices = @transform_4, window_bounds = array<i64: 2, 128>}, {pipeline_mode = #tpu.pipeline_mode<synchronous>, transform_indices = @transform_5, window_bounds = array<i64: 64, 256>}, {pipeline_mode = #tpu.pipeline_mode<synchronous>, transform_indices = @transform_6, window_bounds = array<i64: 32, 128>}, {pipeline_mode = #tpu.pipeline_mode<synchronous>, transform_indices = @transform_7, window_bounds = array<i64: 1, 128>}, {pipeline_mode = #tpu.pipeline_mode<synchronous>, transform_indices = @transform_8, window_bounds = array<i64: 1, 128>}, {pipeline_mode = #tpu.pipeline_mode<synchronous>, transform_indices = @transform_9, window_bounds = array<i64: 2, 32>}, {pipeline_mode = #tpu.pipeline_mode<synchronous>, transform_indices = @transform_10, window_bounds = array<i64: 2, 32>}]} {
    %c0 = arith.constant 0 : index
    %c0_0 = arith.constant 0 : index
    %0 = vector.load %arg1[%c0, %c0_0] : memref<8x16xbf16, #tpu.memory_space<vmem>>, vector<8x16xbf16>
    %c0_1 = arith.constant 0 : index
    %c0_2 = arith.constant 0 : index
    %1 = vector.load %arg4[%c0_1, %c0_2] : memref<16x128xbf16, #tpu.memory_space<vmem>>, vector<16x128xbf16>
    %cst = arith.constant dense<0.000000e+00> : vector<8x128xf32>
    %2 = tpu.matmul %0, %1, %cst {dimension_numbers = #tpu.dot_dimension_numbers<[1], [0], [0], [1], [0, 0, 1, 1], [], []>} : vector<8x16xbf16>, vector<16x128xbf16>, vector<8x128xf32> -> vector<8x128xf32>
    %c0_3 = arith.constant 0 : index
    %c0_4 = arith.constant 0 : index
    %3 = vector.load %arg5[%c0_3, %c0_4] : memref<2x128xf32, #tpu.memory_space<vmem>>, vector<1x128xf32>
    %4 = vector.broadcast %3 : vector<1x128xf32> to vector<8x128xf32>
    %5 = arith.addf %2, %4 : vector<8x128xf32>
    %c0_5 = arith.constant 0 : index
    %c0_6 = arith.constant 0 : index
    %6 = vector.load %arg6[%c0_5, %c0_6] : memref<64x256xbf16, #tpu.memory_space<vmem>>, vector<64x256xbf16>
    %c0_7 = arith.constant 0 : index
    %c0_8 = arith.constant 0 : index
    %7 = vector.load %arg2[%c0_7, %c0_8] : memref<2x32xf32, #tpu.memory_space<vmem>>, vector<1x32xf32>
    %c1 = arith.constant 1 : index
    %c0_9 = arith.constant 0 : index
    %8 = vector.load %arg2[%c1, %c0_9] : memref<2x32xf32, #tpu.memory_space<vmem>>, vector<1x32xf32>
    %c0_10 = arith.constant 0 : index
    %c0_11 = arith.constant 0 : index
    %9 = vector.load %arg3[%c0_10, %c0_11] : memref<2x32xf32, #tpu.memory_space<vmem>>, vector<1x32xf32>
    %c1_12 = arith.constant 1 : index
    %c0_13 = arith.constant 0 : index
    %10 = vector.load %arg3[%c1_12, %c0_13] : memref<2x32xf32, #tpu.memory_space<vmem>>, vector<1x32xf32>
    %11 = tpu.concatenate %7, %8 in 1 : vector<1x32xf32>, vector<1x32xf32> -> vector<1x64xf32>
    %12 = arith.truncf %11 : vector<1x64xf32> to vector<1x64xbf16>
    %cst_14 = arith.constant dense<0.000000e+00> : vector<1x256xf32>
    %13 = tpu.matmul %12, %6, %cst_14 {dimension_numbers = #tpu.dot_dimension_numbers<[1], [0], [0], [1], [0, 0, 1, 1], [], []>} : vector<1x64xbf16>, vector<64x256xbf16>, vector<1x256xf32> -> vector<1x256xf32>
    %14 = vector.extract_strided_slice %5 {offsets = [0, 0], sizes = [1, 128], strides = [1, 1]} : vector<8x128xf32> to vector<1x128xf32>
    %15 = vector.extract_strided_slice %13 {offsets = [0, 0], sizes = [1, 128], strides = [1, 1]} : vector<1x256xf32> to vector<1x128xf32>
    %16 = arith.addf %14, %15 : vector<1x128xf32>
    %17 = arith.negf %16 : vector<1x128xf32>
    %18 = math.exp %17 : vector<1x128xf32>
    %cst_15 = arith.constant 1.000000e+00 : f32
    %19 = vector.broadcast %cst_15 : f32 to vector<1x128xf32>
    %20 = arith.addf %19, %18 : vector<1x128xf32>
    %21 = arith.divf %19, %20 : vector<1x128xf32>
    %22 = math.tanh %16 : vector<1x128xf32>
    %23 = vector.extract_strided_slice %21 {offsets = [0, 0], sizes = [1, 32], strides = [1, 1]} : vector<1x128xf32> to vector<1x32xf32>
    %24 = vector.extract_strided_slice %21 {offsets = [0, 32], sizes = [1, 32], strides = [1, 1]} : vector<1x128xf32> to vector<1x32xf32>
    %25 = vector.extract_strided_slice %22 {offsets = [0, 64], sizes = [1, 32], strides = [1, 1]} : vector<1x128xf32> to vector<1x32xf32>
    %26 = vector.extract_strided_slice %21 {offsets = [0, 96], sizes = [1, 32], strides = [1, 1]} : vector<1x128xf32> to vector<1x32xf32>
    %27 = arith.mulf %24, %9 : vector<1x32xf32>
    %28 = arith.mulf %23, %25 : vector<1x32xf32>
    %29 = arith.addf %27, %28 : vector<1x32xf32>
    %30 = math.tanh %29 : vector<1x32xf32>
    %31 = arith.mulf %26, %30 : vector<1x32xf32>
    %32 = tpu.concatenate %31, %8 in 1 : vector<1x32xf32>, vector<1x32xf32> -> vector<1x64xf32>
    %33 = arith.truncf %32 : vector<1x64xf32> to vector<1x64xbf16>
    %cst_16 = arith.constant dense<0.000000e+00> : vector<1x256xf32>
    %34 = tpu.matmul %33, %6, %cst_16 {dimension_numbers = #tpu.dot_dimension_numbers<[1], [0], [0], [1], [0, 0, 1, 1], [], []>} : vector<1x64xbf16>, vector<64x256xbf16>, vector<1x256xf32> -> vector<1x256xf32>
    %35 = vector.extract_strided_slice %5 {offsets = [1, 0], sizes = [1, 128], strides = [1, 1]} : vector<8x128xf32> to vector<1x128xf32>
    %36 = vector.extract_strided_slice %34 {offsets = [0, 0], sizes = [1, 128], strides = [1, 1]} : vector<1x256xf32> to vector<1x128xf32>
    %37 = arith.addf %35, %36 : vector<1x128xf32>
    %38 = arith.negf %37 : vector<1x128xf32>
    %39 = math.exp %38 : vector<1x128xf32>
    %cst_17 = arith.constant 1.000000e+00 : f32
    %40 = vector.broadcast %cst_17 : f32 to vector<1x128xf32>
    %41 = arith.addf %40, %39 : vector<1x128xf32>
    %42 = arith.divf %40, %41 : vector<1x128xf32>
    %43 = math.tanh %37 : vector<1x128xf32>
    %44 = vector.extract_strided_slice %42 {offsets = [0, 0], sizes = [1, 32], strides = [1, 1]} : vector<1x128xf32> to vector<1x32xf32>
    %45 = vector.extract_strided_slice %42 {offsets = [0, 32], sizes = [1, 32], strides = [1, 1]} : vector<1x128xf32> to vector<1x32xf32>
    %46 = vector.extract_strided_slice %43 {offsets = [0, 64], sizes = [1, 32], strides = [1, 1]} : vector<1x128xf32> to vector<1x32xf32>
    %47 = vector.extract_strided_slice %42 {offsets = [0, 96], sizes = [1, 32], strides = [1, 1]} : vector<1x128xf32> to vector<1x32xf32>
    %48 = arith.mulf %45, %29 : vector<1x32xf32>
    %49 = arith.mulf %44, %46 : vector<1x32xf32>
    %50 = arith.addf %48, %49 : vector<1x32xf32>
    %51 = math.tanh %50 : vector<1x32xf32>
    %52 = arith.mulf %47, %51 : vector<1x32xf32>
    %53 = vector.extract_strided_slice %34 {offsets = [0, 128], sizes = [1, 128], strides = [1, 1]} : vector<1x256xf32> to vector<1x128xf32>
    %c1_18 = arith.constant 1 : index
    %c0_19 = arith.constant 0 : index
    %54 = vector.load %arg5[%c1_18, %c0_19] : memref<2x128xf32, #tpu.memory_space<vmem>>, vector<1x128xf32>
    %55 = arith.addf %53, %54 : vector<1x128xf32>
    %56 = arith.negf %55 : vector<1x128xf32>
    %57 = math.exp %56 : vector<1x128xf32>
    %cst_20 = arith.constant 1.000000e+00 : f32
    %58 = vector.broadcast %cst_20 : f32 to vector<1x128xf32>
    %59 = arith.addf %58, %57 : vector<1x128xf32>
    %60 = arith.divf %58, %59 : vector<1x128xf32>
    %61 = math.tanh %55 : vector<1x128xf32>
    %62 = vector.extract_strided_slice %60 {offsets = [0, 0], sizes = [1, 32], strides = [1, 1]} : vector<1x128xf32> to vector<1x32xf32>
    %63 = vector.extract_strided_slice %60 {offsets = [0, 32], sizes = [1, 32], strides = [1, 1]} : vector<1x128xf32> to vector<1x32xf32>
    %64 = vector.extract_strided_slice %61 {offsets = [0, 64], sizes = [1, 32], strides = [1, 1]} : vector<1x128xf32> to vector<1x32xf32>
    %65 = vector.extract_strided_slice %60 {offsets = [0, 96], sizes = [1, 32], strides = [1, 1]} : vector<1x128xf32> to vector<1x32xf32>
    %66 = arith.mulf %63, %10 : vector<1x32xf32>
    %67 = arith.mulf %62, %64 : vector<1x32xf32>
    %68 = arith.addf %66, %67 : vector<1x32xf32>
    %69 = math.tanh %68 : vector<1x32xf32>
    %70 = arith.mulf %65, %69 : vector<1x32xf32>
    %71 = tpu.concatenate %52, %70 in 1 : vector<1x32xf32>, vector<1x32xf32> -> vector<1x64xf32>
    %72 = arith.truncf %71 : vector<1x64xf32> to vector<1x64xbf16>
    %cst_21 = arith.constant dense<0.000000e+00> : vector<1x256xf32>
    %73 = tpu.matmul %72, %6, %cst_21 {dimension_numbers = #tpu.dot_dimension_numbers<[1], [0], [0], [1], [0, 0, 1, 1], [], []>} : vector<1x64xbf16>, vector<64x256xbf16>, vector<1x256xf32> -> vector<1x256xf32>
    %74 = vector.extract_strided_slice %5 {offsets = [2, 0], sizes = [1, 128], strides = [1, 1]} : vector<8x128xf32> to vector<1x128xf32>
    %75 = vector.extract_strided_slice %73 {offsets = [0, 0], sizes = [1, 128], strides = [1, 1]} : vector<1x256xf32> to vector<1x128xf32>
    %76 = arith.addf %74, %75 : vector<1x128xf32>
    %77 = arith.negf %76 : vector<1x128xf32>
    %78 = math.exp %77 : vector<1x128xf32>
    %cst_22 = arith.constant 1.000000e+00 : f32
    %79 = vector.broadcast %cst_22 : f32 to vector<1x128xf32>
    %80 = arith.addf %79, %78 : vector<1x128xf32>
    %81 = arith.divf %79, %80 : vector<1x128xf32>
    %82 = math.tanh %76 : vector<1x128xf32>
    %83 = vector.extract_strided_slice %81 {offsets = [0, 0], sizes = [1, 32], strides = [1, 1]} : vector<1x128xf32> to vector<1x32xf32>
    %84 = vector.extract_strided_slice %81 {offsets = [0, 32], sizes = [1, 32], strides = [1, 1]} : vector<1x128xf32> to vector<1x32xf32>
    %85 = vector.extract_strided_slice %82 {offsets = [0, 64], sizes = [1, 32], strides = [1, 1]} : vector<1x128xf32> to vector<1x32xf32>
    %86 = vector.extract_strided_slice %81 {offsets = [0, 96], sizes = [1, 32], strides = [1, 1]} : vector<1x128xf32> to vector<1x32xf32>
    %87 = arith.mulf %84, %50 : vector<1x32xf32>
    %88 = arith.mulf %83, %85 : vector<1x32xf32>
    %89 = arith.addf %87, %88 : vector<1x32xf32>
    %90 = math.tanh %89 : vector<1x32xf32>
    %91 = arith.mulf %86, %90 : vector<1x32xf32>
    %92 = vector.extract_strided_slice %73 {offsets = [0, 128], sizes = [1, 128], strides = [1, 1]} : vector<1x256xf32> to vector<1x128xf32>
    %c1_23 = arith.constant 1 : index
    %c0_24 = arith.constant 0 : index
    %93 = vector.load %arg5[%c1_23, %c0_24] : memref<2x128xf32, #tpu.memory_space<vmem>>, vector<1x128xf32>
    %94 = arith.addf %92, %93 : vector<1x128xf32>
    %95 = arith.negf %94 : vector<1x128xf32>
    %96 = math.exp %95 : vector<1x128xf32>
    %cst_25 = arith.constant 1.000000e+00 : f32
    %97 = vector.broadcast %cst_25 : f32 to vector<1x128xf32>
    %98 = arith.addf %97, %96 : vector<1x128xf32>
    %99 = arith.divf %97, %98 : vector<1x128xf32>
    %100 = math.tanh %94 : vector<1x128xf32>
    %101 = vector.extract_strided_slice %99 {offsets = [0, 0], sizes = [1, 32], strides = [1, 1]} : vector<1x128xf32> to vector<1x32xf32>
    %102 = vector.extract_strided_slice %99 {offsets = [0, 32], sizes = [1, 32], strides = [1, 1]} : vector<1x128xf32> to vector<1x32xf32>
    %103 = vector.extract_strided_slice %100 {offsets = [0, 64], sizes = [1, 32], strides = [1, 1]} : vector<1x128xf32> to vector<1x32xf32>
    %104 = vector.extract_strided_slice %99 {offsets = [0, 96], sizes = [1, 32], strides = [1, 1]} : vector<1x128xf32> to vector<1x32xf32>
    %105 = arith.mulf %102, %68 : vector<1x32xf32>
    %106 = arith.mulf %101, %103 : vector<1x32xf32>
    %107 = arith.addf %105, %106 : vector<1x32xf32>
    %108 = math.tanh %107 : vector<1x32xf32>
    %109 = arith.mulf %104, %108 : vector<1x32xf32>
    %110 = tpu.concatenate %91, %109 in 1 : vector<1x32xf32>, vector<1x32xf32> -> vector<1x64xf32>
    %111 = arith.truncf %110 : vector<1x64xf32> to vector<1x64xbf16>
    %cst_26 = arith.constant dense<0.000000e+00> : vector<1x256xf32>
    %112 = tpu.matmul %111, %6, %cst_26 {dimension_numbers = #tpu.dot_dimension_numbers<[1], [0], [0], [1], [0, 0, 1, 1], [], []>} : vector<1x64xbf16>, vector<64x256xbf16>, vector<1x256xf32> -> vector<1x256xf32>
    %113 = vector.extract_strided_slice %5 {offsets = [3, 0], sizes = [1, 128], strides = [1, 1]} : vector<8x128xf32> to vector<1x128xf32>
    %114 = vector.extract_strided_slice %112 {offsets = [0, 0], sizes = [1, 128], strides = [1, 1]} : vector<1x256xf32> to vector<1x128xf32>
    %115 = arith.addf %113, %114 : vector<1x128xf32>
    %116 = arith.negf %115 : vector<1x128xf32>
    %117 = math.exp %116 : vector<1x128xf32>
    %cst_27 = arith.constant 1.000000e+00 : f32
    %118 = vector.broadcast %cst_27 : f32 to vector<1x128xf32>
    %119 = arith.addf %118, %117 : vector<1x128xf32>
    %120 = arith.divf %118, %119 : vector<1x128xf32>
    %121 = math.tanh %115 : vector<1x128xf32>
    %122 = vector.extract_strided_slice %120 {offsets = [0, 0], sizes = [1, 32], strides = [1, 1]} : vector<1x128xf32> to vector<1x32xf32>
    %123 = vector.extract_strided_slice %120 {offsets = [0, 32], sizes = [1, 32], strides = [1, 1]} : vector<1x128xf32> to vector<1x32xf32>
    %124 = vector.extract_strided_slice %121 {offsets = [0, 64], sizes = [1, 32], strides = [1, 1]} : vector<1x128xf32> to vector<1x32xf32>
    %125 = vector.extract_strided_slice %120 {offsets = [0, 96], sizes = [1, 32], strides = [1, 1]} : vector<1x128xf32> to vector<1x32xf32>
    %126 = arith.mulf %123, %89 : vector<1x32xf32>
    %127 = arith.mulf %122, %124 : vector<1x32xf32>
    %128 = arith.addf %126, %127 : vector<1x32xf32>
    %129 = math.tanh %128 : vector<1x32xf32>
    %130 = arith.mulf %125, %129 : vector<1x32xf32>
    %131 = vector.extract_strided_slice %112 {offsets = [0, 128], sizes = [1, 128], strides = [1, 1]} : vector<1x256xf32> to vector<1x128xf32>
    %c1_28 = arith.constant 1 : index
    %c0_29 = arith.constant 0 : index
    %132 = vector.load %arg5[%c1_28, %c0_29] : memref<2x128xf32, #tpu.memory_space<vmem>>, vector<1x128xf32>
    %133 = arith.addf %131, %132 : vector<1x128xf32>
    %134 = arith.negf %133 : vector<1x128xf32>
    %135 = math.exp %134 : vector<1x128xf32>
    %cst_30 = arith.constant 1.000000e+00 : f32
    %136 = vector.broadcast %cst_30 : f32 to vector<1x128xf32>
    %137 = arith.addf %136, %135 : vector<1x128xf32>
    %138 = arith.divf %136, %137 : vector<1x128xf32>
    %139 = math.tanh %133 : vector<1x128xf32>
    %140 = vector.extract_strided_slice %138 {offsets = [0, 0], sizes = [1, 32], strides = [1, 1]} : vector<1x128xf32> to vector<1x32xf32>
    %141 = vector.extract_strided_slice %138 {offsets = [0, 32], sizes = [1, 32], strides = [1, 1]} : vector<1x128xf32> to vector<1x32xf32>
    %142 = vector.extract_strided_slice %139 {offsets = [0, 64], sizes = [1, 32], strides = [1, 1]} : vector<1x128xf32> to vector<1x32xf32>
    %143 = vector.extract_strided_slice %138 {offsets = [0, 96], sizes = [1, 32], strides = [1, 1]} : vector<1x128xf32> to vector<1x32xf32>
    %144 = arith.mulf %141, %107 : vector<1x32xf32>
    %145 = arith.mulf %140, %142 : vector<1x32xf32>
    %146 = arith.addf %144, %145 : vector<1x32xf32>
    %147 = math.tanh %146 : vector<1x32xf32>
    %148 = arith.mulf %143, %147 : vector<1x32xf32>
    %149 = tpu.concatenate %130, %148 in 1 : vector<1x32xf32>, vector<1x32xf32> -> vector<1x64xf32>
    %150 = arith.truncf %149 : vector<1x64xf32> to vector<1x64xbf16>
    %cst_31 = arith.constant dense<0.000000e+00> : vector<1x256xf32>
    %151 = tpu.matmul %150, %6, %cst_31 {dimension_numbers = #tpu.dot_dimension_numbers<[1], [0], [0], [1], [0, 0, 1, 1], [], []>} : vector<1x64xbf16>, vector<64x256xbf16>, vector<1x256xf32> -> vector<1x256xf32>
    %152 = vector.extract_strided_slice %5 {offsets = [4, 0], sizes = [1, 128], strides = [1, 1]} : vector<8x128xf32> to vector<1x128xf32>
    %153 = vector.extract_strided_slice %151 {offsets = [0, 0], sizes = [1, 128], strides = [1, 1]} : vector<1x256xf32> to vector<1x128xf32>
    %154 = arith.addf %152, %153 : vector<1x128xf32>
    %155 = arith.negf %154 : vector<1x128xf32>
    %156 = math.exp %155 : vector<1x128xf32>
    %cst_32 = arith.constant 1.000000e+00 : f32
    %157 = vector.broadcast %cst_32 : f32 to vector<1x128xf32>
    %158 = arith.addf %157, %156 : vector<1x128xf32>
    %159 = arith.divf %157, %158 : vector<1x128xf32>
    %160 = math.tanh %154 : vector<1x128xf32>
    %161 = vector.extract_strided_slice %159 {offsets = [0, 0], sizes = [1, 32], strides = [1, 1]} : vector<1x128xf32> to vector<1x32xf32>
    %162 = vector.extract_strided_slice %159 {offsets = [0, 32], sizes = [1, 32], strides = [1, 1]} : vector<1x128xf32> to vector<1x32xf32>
    %163 = vector.extract_strided_slice %160 {offsets = [0, 64], sizes = [1, 32], strides = [1, 1]} : vector<1x128xf32> to vector<1x32xf32>
    %164 = vector.extract_strided_slice %159 {offsets = [0, 96], sizes = [1, 32], strides = [1, 1]} : vector<1x128xf32> to vector<1x32xf32>
    %165 = arith.mulf %162, %128 : vector<1x32xf32>
    %166 = arith.mulf %161, %163 : vector<1x32xf32>
    %167 = arith.addf %165, %166 : vector<1x32xf32>
    %168 = math.tanh %167 : vector<1x32xf32>
    %169 = arith.mulf %164, %168 : vector<1x32xf32>
    %170 = vector.extract_strided_slice %151 {offsets = [0, 128], sizes = [1, 128], strides = [1, 1]} : vector<1x256xf32> to vector<1x128xf32>
    %c1_33 = arith.constant 1 : index
    %c0_34 = arith.constant 0 : index
    %171 = vector.load %arg5[%c1_33, %c0_34] : memref<2x128xf32, #tpu.memory_space<vmem>>, vector<1x128xf32>
    %172 = arith.addf %170, %171 : vector<1x128xf32>
    %173 = arith.negf %172 : vector<1x128xf32>
    %174 = math.exp %173 : vector<1x128xf32>
    %cst_35 = arith.constant 1.000000e+00 : f32
    %175 = vector.broadcast %cst_35 : f32 to vector<1x128xf32>
    %176 = arith.addf %175, %174 : vector<1x128xf32>
    %177 = arith.divf %175, %176 : vector<1x128xf32>
    %178 = math.tanh %172 : vector<1x128xf32>
    %179 = vector.extract_strided_slice %177 {offsets = [0, 0], sizes = [1, 32], strides = [1, 1]} : vector<1x128xf32> to vector<1x32xf32>
    %180 = vector.extract_strided_slice %177 {offsets = [0, 32], sizes = [1, 32], strides = [1, 1]} : vector<1x128xf32> to vector<1x32xf32>
    %181 = vector.extract_strided_slice %178 {offsets = [0, 64], sizes = [1, 32], strides = [1, 1]} : vector<1x128xf32> to vector<1x32xf32>
    %182 = vector.extract_strided_slice %177 {offsets = [0, 96], sizes = [1, 32], strides = [1, 1]} : vector<1x128xf32> to vector<1x32xf32>
    %183 = arith.mulf %180, %146 : vector<1x32xf32>
    %184 = arith.mulf %179, %181 : vector<1x32xf32>
    %185 = arith.addf %183, %184 : vector<1x32xf32>
    %186 = math.tanh %185 : vector<1x32xf32>
    %187 = arith.mulf %182, %186 : vector<1x32xf32>
    %188 = tpu.concatenate %169, %187 in 1 : vector<1x32xf32>, vector<1x32xf32> -> vector<1x64xf32>
    %189 = arith.truncf %188 : vector<1x64xf32> to vector<1x64xbf16>
    %cst_36 = arith.constant dense<0.000000e+00> : vector<1x256xf32>
    %190 = tpu.matmul %189, %6, %cst_36 {dimension_numbers = #tpu.dot_dimension_numbers<[1], [0], [0], [1], [0, 0, 1, 1], [], []>} : vector<1x64xbf16>, vector<64x256xbf16>, vector<1x256xf32> -> vector<1x256xf32>
    %191 = vector.extract_strided_slice %5 {offsets = [5, 0], sizes = [1, 128], strides = [1, 1]} : vector<8x128xf32> to vector<1x128xf32>
    %192 = vector.extract_strided_slice %190 {offsets = [0, 0], sizes = [1, 128], strides = [1, 1]} : vector<1x256xf32> to vector<1x128xf32>
    %193 = arith.addf %191, %192 : vector<1x128xf32>
    %194 = arith.negf %193 : vector<1x128xf32>
    %195 = math.exp %194 : vector<1x128xf32>
    %cst_37 = arith.constant 1.000000e+00 : f32
    %196 = vector.broadcast %cst_37 : f32 to vector<1x128xf32>
    %197 = arith.addf %196, %195 : vector<1x128xf32>
    %198 = arith.divf %196, %197 : vector<1x128xf32>
    %199 = math.tanh %193 : vector<1x128xf32>
    %200 = vector.extract_strided_slice %198 {offsets = [0, 0], sizes = [1, 32], strides = [1, 1]} : vector<1x128xf32> to vector<1x32xf32>
    %201 = vector.extract_strided_slice %198 {offsets = [0, 32], sizes = [1, 32], strides = [1, 1]} : vector<1x128xf32> to vector<1x32xf32>
    %202 = vector.extract_strided_slice %199 {offsets = [0, 64], sizes = [1, 32], strides = [1, 1]} : vector<1x128xf32> to vector<1x32xf32>
    %203 = vector.extract_strided_slice %198 {offsets = [0, 96], sizes = [1, 32], strides = [1, 1]} : vector<1x128xf32> to vector<1x32xf32>
    %204 = arith.mulf %201, %167 : vector<1x32xf32>
    %205 = arith.mulf %200, %202 : vector<1x32xf32>
    %206 = arith.addf %204, %205 : vector<1x32xf32>
    %207 = math.tanh %206 : vector<1x32xf32>
    %208 = arith.mulf %203, %207 : vector<1x32xf32>
    %209 = vector.extract_strided_slice %190 {offsets = [0, 128], sizes = [1, 128], strides = [1, 1]} : vector<1x256xf32> to vector<1x128xf32>
    %c1_38 = arith.constant 1 : index
    %c0_39 = arith.constant 0 : index
    %210 = vector.load %arg5[%c1_38, %c0_39] : memref<2x128xf32, #tpu.memory_space<vmem>>, vector<1x128xf32>
    %211 = arith.addf %209, %210 : vector<1x128xf32>
    %212 = arith.negf %211 : vector<1x128xf32>
    %213 = math.exp %212 : vector<1x128xf32>
    %cst_40 = arith.constant 1.000000e+00 : f32
    %214 = vector.broadcast %cst_40 : f32 to vector<1x128xf32>
    %215 = arith.addf %214, %213 : vector<1x128xf32>
    %216 = arith.divf %214, %215 : vector<1x128xf32>
    %217 = math.tanh %211 : vector<1x128xf32>
    %218 = vector.extract_strided_slice %216 {offsets = [0, 0], sizes = [1, 32], strides = [1, 1]} : vector<1x128xf32> to vector<1x32xf32>
    %219 = vector.extract_strided_slice %216 {offsets = [0, 32], sizes = [1, 32], strides = [1, 1]} : vector<1x128xf32> to vector<1x32xf32>
    %220 = vector.extract_strided_slice %217 {offsets = [0, 64], sizes = [1, 32], strides = [1, 1]} : vector<1x128xf32> to vector<1x32xf32>
    %221 = vector.extract_strided_slice %216 {offsets = [0, 96], sizes = [1, 32], strides = [1, 1]} : vector<1x128xf32> to vector<1x32xf32>
    %222 = arith.mulf %219, %185 : vector<1x32xf32>
    %223 = arith.mulf %218, %220 : vector<1x32xf32>
    %224 = arith.addf %222, %223 : vector<1x32xf32>
    %225 = math.tanh %224 : vector<1x32xf32>
    %226 = arith.mulf %221, %225 : vector<1x32xf32>
    %227 = tpu.concatenate %208, %226 in 1 : vector<1x32xf32>, vector<1x32xf32> -> vector<1x64xf32>
    %228 = arith.truncf %227 : vector<1x64xf32> to vector<1x64xbf16>
    %cst_41 = arith.constant dense<0.000000e+00> : vector<1x256xf32>
    %229 = tpu.matmul %228, %6, %cst_41 {dimension_numbers = #tpu.dot_dimension_numbers<[1], [0], [0], [1], [0, 0, 1, 1], [], []>} : vector<1x64xbf16>, vector<64x256xbf16>, vector<1x256xf32> -> vector<1x256xf32>
    %230 = vector.extract_strided_slice %5 {offsets = [6, 0], sizes = [1, 128], strides = [1, 1]} : vector<8x128xf32> to vector<1x128xf32>
    %231 = vector.extract_strided_slice %229 {offsets = [0, 0], sizes = [1, 128], strides = [1, 1]} : vector<1x256xf32> to vector<1x128xf32>
    %232 = arith.addf %230, %231 : vector<1x128xf32>
    %233 = arith.negf %232 : vector<1x128xf32>
    %234 = math.exp %233 : vector<1x128xf32>
    %cst_42 = arith.constant 1.000000e+00 : f32
    %235 = vector.broadcast %cst_42 : f32 to vector<1x128xf32>
    %236 = arith.addf %235, %234 : vector<1x128xf32>
    %237 = arith.divf %235, %236 : vector<1x128xf32>
    %238 = math.tanh %232 : vector<1x128xf32>
    %239 = vector.extract_strided_slice %237 {offsets = [0, 0], sizes = [1, 32], strides = [1, 1]} : vector<1x128xf32> to vector<1x32xf32>
    %240 = vector.extract_strided_slice %237 {offsets = [0, 32], sizes = [1, 32], strides = [1, 1]} : vector<1x128xf32> to vector<1x32xf32>
    %241 = vector.extract_strided_slice %238 {offsets = [0, 64], sizes = [1, 32], strides = [1, 1]} : vector<1x128xf32> to vector<1x32xf32>
    %242 = vector.extract_strided_slice %237 {offsets = [0, 96], sizes = [1, 32], strides = [1, 1]} : vector<1x128xf32> to vector<1x32xf32>
    %243 = arith.mulf %240, %206 : vector<1x32xf32>
    %244 = arith.mulf %239, %241 : vector<1x32xf32>
    %245 = arith.addf %243, %244 : vector<1x32xf32>
    %246 = math.tanh %245 : vector<1x32xf32>
    %247 = arith.mulf %242, %246 : vector<1x32xf32>
    %248 = vector.extract_strided_slice %229 {offsets = [0, 128], sizes = [1, 128], strides = [1, 1]} : vector<1x256xf32> to vector<1x128xf32>
    %c1_43 = arith.constant 1 : index
    %c0_44 = arith.constant 0 : index
    %249 = vector.load %arg5[%c1_43, %c0_44] : memref<2x128xf32, #tpu.memory_space<vmem>>, vector<1x128xf32>
    %250 = arith.addf %248, %249 : vector<1x128xf32>
    %251 = arith.negf %250 : vector<1x128xf32>
    %252 = math.exp %251 : vector<1x128xf32>
    %cst_45 = arith.constant 1.000000e+00 : f32
    %253 = vector.broadcast %cst_45 : f32 to vector<1x128xf32>
    %254 = arith.addf %253, %252 : vector<1x128xf32>
    %255 = arith.divf %253, %254 : vector<1x128xf32>
    %256 = math.tanh %250 : vector<1x128xf32>
    %257 = vector.extract_strided_slice %255 {offsets = [0, 0], sizes = [1, 32], strides = [1, 1]} : vector<1x128xf32> to vector<1x32xf32>
    %258 = vector.extract_strided_slice %255 {offsets = [0, 32], sizes = [1, 32], strides = [1, 1]} : vector<1x128xf32> to vector<1x32xf32>
    %259 = vector.extract_strided_slice %256 {offsets = [0, 64], sizes = [1, 32], strides = [1, 1]} : vector<1x128xf32> to vector<1x32xf32>
    %260 = vector.extract_strided_slice %255 {offsets = [0, 96], sizes = [1, 32], strides = [1, 1]} : vector<1x128xf32> to vector<1x32xf32>
    %261 = arith.mulf %258, %224 : vector<1x32xf32>
    %262 = arith.mulf %257, %259 : vector<1x32xf32>
    %263 = arith.addf %261, %262 : vector<1x32xf32>
    %264 = math.tanh %263 : vector<1x32xf32>
    %265 = arith.mulf %260, %264 : vector<1x32xf32>
    %266 = tpu.concatenate %247, %265 in 1 : vector<1x32xf32>, vector<1x32xf32> -> vector<1x64xf32>
    %267 = arith.truncf %266 : vector<1x64xf32> to vector<1x64xbf16>
    %cst_46 = arith.constant dense<0.000000e+00> : vector<1x256xf32>
    %268 = tpu.matmul %267, %6, %cst_46 {dimension_numbers = #tpu.dot_dimension_numbers<[1], [0], [0], [1], [0, 0, 1, 1], [], []>} : vector<1x64xbf16>, vector<64x256xbf16>, vector<1x256xf32> -> vector<1x256xf32>
    %269 = vector.extract_strided_slice %5 {offsets = [7, 0], sizes = [1, 128], strides = [1, 1]} : vector<8x128xf32> to vector<1x128xf32>
    %270 = vector.extract_strided_slice %268 {offsets = [0, 0], sizes = [1, 128], strides = [1, 1]} : vector<1x256xf32> to vector<1x128xf32>
    %271 = arith.addf %269, %270 : vector<1x128xf32>
    %272 = arith.negf %271 : vector<1x128xf32>
    %273 = math.exp %272 : vector<1x128xf32>
    %cst_47 = arith.constant 1.000000e+00 : f32
    %274 = vector.broadcast %cst_47 : f32 to vector<1x128xf32>
    %275 = arith.addf %274, %273 : vector<1x128xf32>
    %276 = arith.divf %274, %275 : vector<1x128xf32>
    %277 = math.tanh %271 : vector<1x128xf32>
    %278 = vector.extract_strided_slice %276 {offsets = [0, 0], sizes = [1, 32], strides = [1, 1]} : vector<1x128xf32> to vector<1x32xf32>
    %279 = vector.extract_strided_slice %276 {offsets = [0, 32], sizes = [1, 32], strides = [1, 1]} : vector<1x128xf32> to vector<1x32xf32>
    %280 = vector.extract_strided_slice %277 {offsets = [0, 64], sizes = [1, 32], strides = [1, 1]} : vector<1x128xf32> to vector<1x32xf32>
    %281 = vector.extract_strided_slice %276 {offsets = [0, 96], sizes = [1, 32], strides = [1, 1]} : vector<1x128xf32> to vector<1x32xf32>
    %282 = arith.mulf %279, %245 : vector<1x32xf32>
    %283 = arith.mulf %278, %280 : vector<1x32xf32>
    %284 = arith.addf %282, %283 : vector<1x32xf32>
    %285 = math.tanh %284 : vector<1x32xf32>
    %286 = arith.mulf %281, %285 : vector<1x32xf32>
    %287 = vector.extract_strided_slice %268 {offsets = [0, 128], sizes = [1, 128], strides = [1, 1]} : vector<1x256xf32> to vector<1x128xf32>
    %c1_48 = arith.constant 1 : index
    %c0_49 = arith.constant 0 : index
    %288 = vector.load %arg5[%c1_48, %c0_49] : memref<2x128xf32, #tpu.memory_space<vmem>>, vector<1x128xf32>
    %289 = arith.addf %287, %288 : vector<1x128xf32>
    %290 = arith.negf %289 : vector<1x128xf32>
    %291 = math.exp %290 : vector<1x128xf32>
    %cst_50 = arith.constant 1.000000e+00 : f32
    %292 = vector.broadcast %cst_50 : f32 to vector<1x128xf32>
    %293 = arith.addf %292, %291 : vector<1x128xf32>
    %294 = arith.divf %292, %293 : vector<1x128xf32>
    %295 = math.tanh %289 : vector<1x128xf32>
    %296 = vector.extract_strided_slice %294 {offsets = [0, 0], sizes = [1, 32], strides = [1, 1]} : vector<1x128xf32> to vector<1x32xf32>
    %297 = vector.extract_strided_slice %294 {offsets = [0, 32], sizes = [1, 32], strides = [1, 1]} : vector<1x128xf32> to vector<1x32xf32>
    %298 = vector.extract_strided_slice %295 {offsets = [0, 64], sizes = [1, 32], strides = [1, 1]} : vector<1x128xf32> to vector<1x32xf32>
    %299 = vector.extract_strided_slice %294 {offsets = [0, 96], sizes = [1, 32], strides = [1, 1]} : vector<1x128xf32> to vector<1x32xf32>
    %300 = arith.mulf %297, %263 : vector<1x32xf32>
    %301 = arith.mulf %296, %298 : vector<1x32xf32>
    %302 = arith.addf %300, %301 : vector<1x32xf32>
    %303 = math.tanh %302 : vector<1x32xf32>
    %304 = arith.mulf %299, %303 : vector<1x32xf32>
    %305 = tpu.concatenate %286, %304 in 1 : vector<1x32xf32>, vector<1x32xf32> -> vector<1x64xf32>
    %306 = arith.truncf %305 : vector<1x64xf32> to vector<1x64xbf16>
    %cst_51 = arith.constant dense<0.000000e+00> : vector<1x256xf32>
    %307 = tpu.matmul %306, %6, %cst_51 {dimension_numbers = #tpu.dot_dimension_numbers<[1], [0], [0], [1], [0, 0, 1, 1], [], []>} : vector<1x64xbf16>, vector<64x256xbf16>, vector<1x256xf32> -> vector<1x256xf32>
    %308 = vector.extract_strided_slice %307 {offsets = [0, 128], sizes = [1, 128], strides = [1, 1]} : vector<1x256xf32> to vector<1x128xf32>
    %c1_52 = arith.constant 1 : index
    %c0_53 = arith.constant 0 : index
    %309 = vector.load %arg5[%c1_52, %c0_53] : memref<2x128xf32, #tpu.memory_space<vmem>>, vector<1x128xf32>
    %310 = arith.addf %308, %309 : vector<1x128xf32>
    %311 = arith.negf %310 : vector<1x128xf32>
    %312 = math.exp %311 : vector<1x128xf32>
    %cst_54 = arith.constant 1.000000e+00 : f32
    %313 = vector.broadcast %cst_54 : f32 to vector<1x128xf32>
    %314 = arith.addf %313, %312 : vector<1x128xf32>
    %315 = arith.divf %313, %314 : vector<1x128xf32>
    %316 = math.tanh %310 : vector<1x128xf32>
    %317 = vector.extract_strided_slice %315 {offsets = [0, 0], sizes = [1, 32], strides = [1, 1]} : vector<1x128xf32> to vector<1x32xf32>
    %318 = vector.extract_strided_slice %315 {offsets = [0, 32], sizes = [1, 32], strides = [1, 1]} : vector<1x128xf32> to vector<1x32xf32>
    %319 = vector.extract_strided_slice %316 {offsets = [0, 64], sizes = [1, 32], strides = [1, 1]} : vector<1x128xf32> to vector<1x32xf32>
    %320 = vector.extract_strided_slice %315 {offsets = [0, 96], sizes = [1, 32], strides = [1, 1]} : vector<1x128xf32> to vector<1x32xf32>
    %321 = arith.mulf %318, %302 : vector<1x32xf32>
    %322 = arith.mulf %317, %319 : vector<1x32xf32>
    %323 = arith.addf %321, %322 : vector<1x32xf32>
    %324 = math.tanh %323 : vector<1x32xf32>
    %325 = arith.mulf %320, %324 : vector<1x32xf32>
    %c0_55 = arith.constant 0 : index
    %c0_56 = arith.constant 0 : index
    %326 = vector.load %arg10[%c0_55, %c0_56] : memref<2x32xf32, #tpu.memory_space<vmem>>, vector<1x32xf32>
    tpu.vector_store %arg10[%c0_55, %c0_56], %286 {strides = array<i32>} : memref<2x32xf32, #tpu.memory_space<vmem>>, vector<1x32xf32>,
    %c0_57 = arith.constant 0 : index
    %c0_58 = arith.constant 0 : index
    %327 = vector.load %arg11[%c0_57, %c0_58] : memref<2x32xf32, #tpu.memory_space<vmem>>, vector<1x32xf32>
    tpu.vector_store %arg11[%c0_57, %c0_58], %284 {strides = array<i32>} : memref<2x32xf32, #tpu.memory_space<vmem>>, vector<1x32xf32>,
    %c1_59 = arith.constant 1 : index
    %c0_60 = arith.constant 0 : index
    %328 = vector.load %arg10[%c1_59, %c0_60] : memref<2x32xf32, #tpu.memory_space<vmem>>, vector<1x32xf32>
    tpu.vector_store %arg10[%c1_59, %c0_60], %325 {strides = array<i32>} : memref<2x32xf32, #tpu.memory_space<vmem>>, vector<1x32xf32>,
    %c1_61 = arith.constant 1 : index
    %c0_62 = arith.constant 0 : index
    %329 = vector.load %arg11[%c1_61, %c0_62] : memref<2x32xf32, #tpu.memory_space<vmem>>, vector<1x32xf32>
    tpu.vector_store %arg11[%c1_61, %c0_62], %323 {strides = array<i32>} : memref<2x32xf32, #tpu.memory_space<vmem>>, vector<1x32xf32>,
    %330 = arith.truncf %325 : vector<1x32xf32> to vector<1x32xbf16>
    %c0_63 = arith.constant 0 : index
    %c0_64 = arith.constant 0 : index
    %331 = vector.load %arg7[%c0_63, %c0_64] : memref<32x128xbf16, #tpu.memory_space<vmem>>, vector<32x128xbf16>
    %cst_65 = arith.constant dense<0.000000e+00> : vector<1x128xf32>
    %332 = tpu.matmul %330, %331, %cst_65 {dimension_numbers = #tpu.dot_dimension_numbers<[1], [0], [0], [1], [0, 0, 1, 1], [], []>} : vector<1x32xbf16>, vector<32x128xbf16>, vector<1x128xf32> -> vector<1x128xf32>
    %c0_66 = arith.constant 0 : index
    %c0_67 = arith.constant 0 : index
    %333 = vector.load %arg8[%c0_66, %c0_67] : memref<1x128xf32, #tpu.memory_space<vmem>>, vector<1x128xf32>
    %334 = arith.addf %332, %333 : vector<1x128xf32>
    %335 = tpu.iota {dimensions = array<i32: 1>} : vector<1x128xi32>
    %c48_i32 = arith.constant 48 : i32
    %336 = vector.broadcast %c48_i32 : i32 to vector<1x128xi32>
    %337 = arith.cmpi slt, %335, %336 : vector<1x128xi32>
    %cst_68 = arith.constant 0xFF800000 : f32
    %338 = vector.broadcast %cst_68 : f32 to vector<1x128xf32>
    %339 = arith.select %337, %334, %338 : vector<1x128xi1>, vector<1x128xf32>
    %cst_69 = arith.constant dense<0xFF800000> : vector<1xf32>
    %340 = vector.multi_reduction <maximumf>, %339, %cst_69 [1] : vector<1x128xf32> to vector<1xf32>
    %341 = vector.shape_cast %340 : vector<1xf32> to vector<1x1xf32>
    %342 = vector.broadcast %341 : vector<1x1xf32> to vector<1x128xf32>
    %343 = arith.subf %339, %342 : vector<1x128xf32>
    %344 = math.exp %343 : vector<1x128xf32>
    %cst_70 = arith.constant dense<0.000000e+00> : vector<1xf32>
    %345 = vector.multi_reduction <add>, %344, %cst_70 [1] : vector<1x128xf32> to vector<1xf32>
    %346 = vector.shape_cast %345 : vector<1xf32> to vector<1x1xf32>
    %347 = math.log %346 : vector<1x1xf32>
    %348 = arith.addf %347, %341 : vector<1x1xf32>
    %349 = vector.broadcast %348 : vector<1x1xf32> to vector<1x128xf32>
    %350 = arith.subf %339, %349 : vector<1x128xf32>
    %c0_71 = arith.constant 0 : index
    %c0_72 = arith.constant 0 : index
    %351 = vector.load %arg9[%c0_71, %c0_72] : memref<1x128xf32, #tpu.memory_space<vmem>>, vector<1x128xf32>
    tpu.vector_store %arg9[%c0_71, %c0_72], %350 {strides = array<i32>} : memref<1x128xf32, #tpu.memory_space<vmem>>, vector<1x128xf32>,
    return
  }
  func.func @transform_0(%arg0: i32) -> (i32, i32) {
    %c0_i32 = arith.constant 0 : i32
    %c0_i32_0 = arith.constant 0 : i32
    %c0_i32_1 = arith.constant 0 : i32
    return %c0_i32, %c0_i32_0 : i32, i32
  }
  func.func @transform_1(%arg0: i32) -> (i32, i32) {
    %c0_i32 = arith.constant 0 : i32
    %c0_i32_0 = arith.constant 0 : i32
    %c0_i32_1 = arith.constant 0 : i32
    return %c0_i32, %c0_i32_0 : i32, i32
  }
  func.func @transform_2(%arg0: i32) -> (i32, i32) {
    %c0_i32 = arith.constant 0 : i32
    %c0_i32_0 = arith.constant 0 : i32
    %c0_i32_1 = arith.constant 0 : i32
    return %c0_i32, %c0_i32_0 : i32, i32
  }
  func.func @transform_3(%arg0: i32) -> (i32, i32) {
    %c0_i32 = arith.constant 0 : i32
    %c0_i32_0 = arith.constant 0 : i32
    %c0_i32_1 = arith.constant 0 : i32
    return %c0_i32, %c0_i32_0 : i32, i32
  }
  func.func @transform_4(%arg0: i32) -> (i32, i32) {
    %c0_i32 = arith.constant 0 : i32
    %c0_i32_0 = arith.constant 0 : i32
    %c0_i32_1 = arith.constant 0 : i32
    return %c0_i32, %c0_i32_0 : i32, i32
  }
  func.func @transform_5(%arg0: i32) -> (i32, i32) {
    %c0_i32 = arith.constant 0 : i32
    %c0_i32_0 = arith.constant 0 : i32
    %c0_i32_1 = arith.constant 0 : i32
    return %c0_i32, %c0_i32_0 : i32, i32
  }
  func.func @transform_6(%arg0: i32) -> (i32, i32) {
    %c0_i32 = arith.constant 0 : i32
    %c0_i32_0 = arith.constant 0 : i32
    %c0_i32_1 = arith.constant 0 : i32
    return %c0_i32, %c0_i32_0 : i32, i32
  }
  func.func @transform_7(%arg0: i32) -> (i32, i32) {
    %c0_i32 = arith.constant 0 : i32
    %c0_i32_0 = arith.constant 0 : i32
    %c0_i32_1 = arith.constant 0 : i32
    return %c0_i32, %c0_i32_0 : i32, i32
  }
  func.func @transform_8(%arg0: i32) -> (i32, i32) {
    %c0_i32 = arith.constant 0 : i32
    %c0_i32_0 = arith.constant 0 : i32
    %c0_i32_1 = arith.constant 0 : i32
    return %c0_i32, %c0_i32_0 : i32, i32
  }
  func.func @transform_9(%arg0: i32) -> (i32, i32) {
    %c0_i32 = arith.constant 0 : i32
    %c0_i32_0 = arith.constant 0 : i32
    %c0_i32_1 = arith.constant 0 : i32
    return %c0_i32, %c0_i32_0 : i32, i32
  }
  func.func @transform_10(%arg0: i32) -> (i32, i32) {
    %c0_i32 = arith.constant 0 : i32
    %c0_i32_0 = arith.constant 0 : i32
    %c0_i32_1 = arith.constant 0 : i32
    return %c0_i32, %c0_i32_0 : i32, i32
  }
}

</mosaic_0001>

<bundles_post_ra>
// kernel: tpu_custom_call.1
= control target key start
LH: loop header
LB: loop body
LE: loop exit
PB: predicated region body
PF: predicated region fallthrough
CT: control target
= control target key end

     0   :  { %16 = vsyncpa [#allocation3], 0  ;;  %s2082_s0 = inlined_call_operand.hbm [shape: bf16[8,16], index: 0, kind: input, shape index: {}]   ;;  %s2083_s1 = inlined_call_operand.vmem [shape: f32[2,32], index: 1, kind: input, shape index: {}]   ;;  %s2084_s2 = inlined_call_operand.vmem [shape: f32[2,32], index: 2, kind: input, shape index: {}]   ;;  %s2085_s3 = inlined_call_operand.hbm [shape: bf16[16,128], index: 3, kind: input, shape index: {}]   ;;  %s2086_s4 = inlined_call_operand.vmem [shape: f32[2,128], index: 4, kind: input, shape index: {}]   ;;  %s2087_s5 = inlined_call_operand.hbm [shape: bf16[64,256], index: 5, kind: input, shape index: {}]   ;;  %s2088_s6 = inlined_call_operand.vmem [shape: bf16[32,128], index: 6, kind: input, shape index: {}]   ;;  %s2089_s7 = inlined_call_operand.vmem [shape: f32[1,128], index: 7, kind: input, shape index: {}]   ;;  %s2090_s8 = inlined_call_operand.hbm [shape: f32[1,128], index: 8, kind: output, shape index: {0}]   ;;  %s2091_s9 = inlined_call_operand.hbm [shape: f32[2,32], index: 9, kind: output, shape index: {1}]   ;;  %s2092_s10 = inlined_call_operand.hbm [shape: f32[2,32], index: 10, kind: output, shape index: {2}]  }
   0x1   :  { %17 = vsyncpa [#allocation6], 0 }
   0x2   :  { %18 = vsyncpa [#allocation4], 0 }
   0x3   :  { %19 = vsyncpa [#allocation10], 0  ;;  %s1645_s13 = smov [#allocation5]   ;;  %s1505_s17 = scalar_lea.hbm %s2085_s3, 128 }
   0x4   :  { %s39_s14 = sshll.u32 %s1645_s13, 4  ;;  %p1506_p0 = scmp.ne.s32.totalorder %s2085_s3, %s1505_s17  ;;  %s40_s14 = int_to_ptr.vmem [resolvable:$true] %s39_s14 }
   0x5   :  { %p1509_p1 = scmp.lt.u32.totalorder %s1505_s17, %s2085_s3 }
   0x7   :  { %p1511_p2 = pnand %p1509_p1, %p1506_p0 }
   0x9   :  { %1514 = shalt.err (!%p1511_p2)
}
   0xa   :  { %s1515_s22 = scalar_lea.vmem %s40_s14, 128  ;;  %p1520_p4 = scmp.lt.s32.totalorder %s40_s14, %s40_s14 }
   0xb   :  { %p1516_p3 = scmp.ne.s32.totalorder %s40_s14, %s1515_s22  ;;  %p1521_p5 = scmp.lt.s32.totalorder %s1515_s22, %s1515_s22 }
   0xd   :  { %p1522_p6 = por %p1521_p5, %p1520_p4 }
   0xf   :  { %p1523_p7 = pnand %p1522_p6, %p1516_p3 }
  0x11   :  { %1526 = shalt.err (!%p1523_p7)
}
  0x12   :  { %s1646_s23 = smov 64   ;;  %s1647_s24 = smov 4  }
  0x13   :  { %45 = dma.hbm_to_vmem [thread:$0]  %s2085_s3, 128, %s40_s14, [#allocation6], %s1646_s23, %s1646_s23, %s1647_s24  }
  0x14   :  { %s1648_s27 = smov [#allocation2]   ;;  %s1649_s29 = smov [#allocation7]  }
  0x15   :  { %s26_s28 = sshll.u32 %s1648_s27, 4  ;;  %s53_s30 = sshll.u32 %s1649_s29, 4  ;;  %s27_s28 = int_to_ptr.vmem [resolvable:$true] %s26_s28  ;;  %s54_s30 = int_to_ptr.vmem [resolvable:$true] %s53_s30 }
  0x16   :  { %s1527_s13 = scalar_lea.hbm %s2082_s0, 64 }
  0x17   :  { %p1528_p8 = scmp.ne.s32.totalorder %s2082_s0, %s1527_s13  ;;  %p1531_p9 = scmp.lt.u32.totalorder %s1527_s13, %s2082_s0 }
  0x19   :  { %p1533_p10 = pnand %p1531_p9, %p1528_p8 }
  0x1b   :  { %1536 = shalt.err (!%p1533_p10)
}
  0x1c   :  { %s1537_s3 = scalar_lea.vmem %s27_s28, 64  ;;  %p1542_p12 = scmp.lt.s32.totalorder %s27_s28, %s27_s28 }
  0x1d   :  { %p1538_p11 = scmp.ne.s32.totalorder %s27_s28, %s1537_s3  ;;  %p1543_p13 = scmp.lt.s32.totalorder %s1537_s3, %s1537_s3 }
  0x1f   :  { %p1544_p0 = por %p1543_p13, %p1542_p12 }
  0x21   :  { %p1545_p1 = pnand %p1544_p0, %p1538_p11 }
  0x23   :  { %1548 = shalt.err (!%p1545_p1)
}
  0x24   :  { %29 = dma.hbm_to_vmem [thread:$0]  %s2082_s0, 64, %s27_s28, [#allocation3]  }
  0x25   :  { %s1549_s22 = scalar_lea.hbm %s2087_s5, 1024 }
  0x26   :  { %p1550_p2 = scmp.ne.s32.totalorder %s2087_s5, %s1549_s22  ;;  %p1553_p3 = scmp.lt.u32.totalorder %s1549_s22, %s2087_s5 }
  0x28   :  { %p1555_p4 = pnand %p1553_p3, %p1550_p2 }
  0x2a   :  { %1558 = shalt.err (!%p1555_p4)
}
  0x2b   :  { %s1559_s29 = scalar_lea.vmem %s54_s30, 1024  ;;  %p1564_p6 = scmp.lt.s32.totalorder %s54_s30, %s54_s30 }
  0x2c   :  { %p1560_p5 = scmp.ne.s32.totalorder %s54_s30, %s1559_s29  ;;  %p1565_p7 = scmp.lt.s32.totalorder %s1559_s29, %s1559_s29 }
  0x2e   :  { %p1566_p8 = por %p1565_p7, %p1564_p6 }
  0x30   :  { %p1567_p9 = pnand %p1566_p8, %p1560_p5 }
  0x32   :  { %1570 = shalt.err (!%p1567_p9)
}
  0x33   :  { %s1650_s0 = smov 128   ;;  %s1651_s28 = smov 8  }
  0x34   :  { %59 = dma.hbm_to_vmem [thread:$0]  %s2087_s5, 1024, %s54_s30, [#allocation6], %s1650_s0, %s1650_s0, %s1651_s28  }
  0x35   :  { %1637 = dma.done.wait [#allocation3], 64  }
  0x36   :  { %1638 = vsyncadd [#allocation3], 4294967232 }
  0x37   :  { %1639 = dma.done.wait [#allocation6], 1152  }
  0x38   :  { %1640 = vsyncadd [#allocation6], 4294966144  ;;  %v1652_v0 = vmov 0.0   ;;  %vm1653_vm0 = vmmov 0   ;;  %v1654_v1 = vmov 0   ;;  %s1655_s16 = smov 32  }
  0x39   :  { %1329 = vmatprep.subr.bf16.mxu0 %v1652_v0  ;;  %1331 = vmatprep.mubr.msk.bf16.mxu0 %vm1653_vm0, %v1652_v0  ;;  %v141_v2 = vld [vmem:[%s2083_s1 + $0x1] sm:$0x1]  ;;  %v1763_v4 = vld [vmem:[#allocation7] ss:$8 sps:$4 sm:$0xff]   ;;  %v1765_v5 = vld [vmem:[#allocation7 + $0x14] ss:$8 sps:$4 sm:$0xff]  }
  0x3a   :  { %227 = vmatprep.mubr.bf16.mxu1 %v1654_v1  ;;  %145 = vrot.lane.b32.xlu0 %v141_v2, %s1655_s16  ;;  %v1761_v3 = vld [vmem:[#allocation7 + $0x4] ss:$8 sps:$4 sm:$0xff]   ;;  %v1364_v6 = vld [vmem:[#allocation5] sm:$0xff]   ;;  %v74_v9 = vld [vmem:[#allocation2] sm:$0xf]  ;;  %vm88_vm1 = vcmask 130048  }
  0x3b   :  { %195 = vmatprep.subr.bf16.mxu1 %v1761_v3  ;;  %v1769_v7 = vld [vmem:[#allocation7 + $0x10] ss:$8 sps:$4 sm:$0xff]   ;;  %1330 = vmatpush3.bf16.msra.mxu0 %v1364_v6  ;;  %v1772_v8 = vld [vmem:[#allocation7 + $0x24] ss:$8 sps:$4 sm:$0xff]   ;;  %v1775_v10 = vld [vmem:[#allocation7 + $0x20] ss:$8 sps:$4 sm:$0xff]  }
  0x3c   :  { %196 = vmatpush1.bf16.msra.mxu1 %v1763_v4  ;;  %273 = vmatprep.subr.bf16.mxu0 %v1761_v3  ;;  %v142_v11 = vld [vmem:[%s2084_s2] sm:$0x1]  ;;  %v1782_v12 = vld [vmem:[#allocation7 + $0x34] ss:$8 sps:$4 sm:$0xff]   ;;  %v1789_v13 = vld [vmem:[#allocation7 + $0x30] ss:$8 sps:$4 sm:$0xff]  }
  0x3d   :  { %197 = vmatprep.subr.bf16.mxu1 %v1765_v5  ;;  %244 = vrot.lane.b32.xlu1 %v142_v11, %s1655_s16  ;;  %vm148_vm2 = vcmask 261120   ;;  %v140_v14 = vld [vmem:[%s2083_s1] sm:$0x1]  ;;  %vm191_vm3 = vcmask 523264   ;;  %v1838_v46 = vld [vmem:[%s2086_s4 + $0x1] sm:$0x1] }
  0x3e   :  { %1332 = vmatmul.mubr.msk.bf16.vlgmr.msra.gmra.mrb[0].mxu0 %vm88_vm1, %v74_v9  ;;  %v1285_v22 = vld [vmem:[%s2086_s4] ss:$0 sm:$0xff]  ;;  %v143_v56 = vld [vmem:[%s2084_s2 + $0x1] sm:$0x1]  ;;  %vm1141_vm4 = vcmask 261127   ;;  %vm1227_vm6 = vcmask 1040384  }
  0x3f   :  { %274 = vmatpush1.bf16.msra.mxu0 %v1763_v4  ;;  %305 = vmatprep.mubr.bf16.mxu0 %v1654_v1  ;;  %vm1152_vm7 = vcmask 253952   ;;  %s1658_s27 = smov [#allocation11]  }
  0x40   :  { %198 = vmatpush1.bf16.msra.mxu1 %v1769_v7  ;;  %275 = vmatprep.subr.bf16.mxu0 %v1765_v5  ;;  %s1268_s29 = sshll.u32 %s1658_s27, 4  ;;  %s1269_s29 = int_to_ptr.vmem [resolvable:$true] %s1268_s29 }
  0x41   :  { %199 = vmatprep.subr.bf16.mxu1 %v1772_v8 }
  0x43   :  { %276 = vmatpush1.bf16.msra.mxu0 %v1769_v7 }
  0x44   :  { %200 = vmatpush1.bf16.msra.mxu1 %v1775_v10  ;;  %277 = vmatprep.subr.bf16.mxu0 %v1772_v8 }
  0x45   :  { %201 = vmatprep.subr.bf16.mxu1 %v1782_v12 }
  0x47   :  { %278 = vmatpush1.bf16.msra.mxu0 %v1775_v10 }
  0x48   :  { %202 = vmatpush1.bf16.msra.mxu1 %v1789_v13  ;;  %279 = vmatprep.subr.bf16.mxu0 %v1782_v12 }
  0x49   :  { %392 = vmatprep.subr.bf16.mxu1 %v1761_v3 }
  0x4b   :  { %280 = vmatpush1.bf16.msra.mxu0 %v1789_v13 }
  0x4c   :  { %505 = vmatprep.subr.bf16.mxu0 %v1761_v3 }
  0xac   :  { %v146_v15 = vpop.permute.xlu0 %145 }
  0xad   :  { %v149_v16 = vsel %vm148_vm2, %v140_v14, %v146_v15 }
  0xae   :  { %v150_v17 = vpack.c.bf16 %v149_v16, %v149_v16 }
  0xaf   :  { %v245_v36 = vpop.permute.xlu1 %244 }
  0xb0   :  { %1296 = vmatmul.mubr.msk.bf16.vlgmr.msra.gmra.mrb[0].mxu1 %vm191_vm3, %v150_v17 }
  0xb1   :  { %393 = vmatpush1.bf16.msra.mxu1 %v1763_v4  ;;  %424 = vmatprep.mubr.bf16.mxu1 %v1654_v1 }
  0xb2   :  { %394 = vmatprep.subr.bf16.mxu1 %v1765_v5 }
  0xb5   :  { %395 = vmatpush1.bf16.msra.mxu1 %v1769_v7 }
  0xb6   :  { %396 = vmatprep.subr.bf16.mxu1 %v1772_v8 }
  0xb9   :  { %397 = vmatpush1.bf16.msra.mxu1 %v1775_v10 }
  0xba   :  { %398 = vmatprep.subr.bf16.mxu1 %v1782_v12 }
  0xbd   :  { %399 = vmatpush1.bf16.msra.mxu1 %v1789_v13 }
  0xbe   :  { %620 = vmatprep.subr.bf16.mxu1 %v1761_v3 }
 0x111   :  { %v126_v18 = vpop.f32.mrb[0].mxu0 }
 0x112   :  { %v1333_v19 = vpop.f32.mrb[1].mxu0  ;;  %v1817_v23 = vadd.f32 %v1285_v22, %v126_v18 }
 0x113   :  { %v129_v20 = vpop.f32.mrb[2].mxu0 }
 0x114   :  { %v1334_v21 = vpop.f32.mrb[3].mxu0 }
 0x183   :  { %v229_v24 = vpop.f32.mrb[0].mxu1 }
 0x184   :  { %v235_v25 = vadd.f32 %v229_v24, %v1817_v23  ;;  %v231_v26 = vpop.f32.mrb[1].mxu1 }
 0x185   :  { %v232_v27 = vpop.f32.mrb[2].mxu1 }
 0x186   :  { %1373 = vtanh.f32 %v235_v25  ;;  %v233_v28 = vpop.f32.mrb[3].mxu1  ;;  %v1297_v30 = vmul.f32 -1.442695, %v235_v25 }
 0x188   :  { %1375 = vpow2.f32 %v1297_v30 }
 0x190   :  { %v1374_v29 = vpop.eup %1373 }
 0x191   :  { %249 = vrot.lane.b32.xlu0 %v1374_v29, %s1646_s23 }
 0x192   :  { %v1376_v31 = vpop.eup %1375 }
 0x193   :  { %v239_v32 = vadd.f32 1.0, %v1376_v31 }
 0x195   :  { %1377 = vrcp.f32 %v239_v32 }
 0x19f   :  { %v1378_v33 = vpop.eup %1377 }
 0x1a0   :  { %v247_v37 = vmul.f32 %v1378_v33, %v245_v36 }
 0x203   :  { %v250_v34 = vpop.permute.xlu0 %249 }
 0x204   :  { %v252_v35 = vmul.f32 %v1378_v33, %v250_v34 }
 0x206   :  { %254 = vrot.lane.b32.xlu1 %v252_v35, %s1655_s16 }
 0x278   :  { %v255_v38 = vpop.permute.xlu1 %254 }
 0x279   :  { %v257_v39 = vadd.f32 %v255_v38, %v247_v37 }
 0x27b   :  { %1379 = vtanh.f32 %v257_v39  ;;  %v326_v16 = vrot.slane %v257_v39, 7 }
 0x285   :  { %v1380_v40 = vpop.eup %1379 }
 0x286   :  { %260 = vrot.lane.b32.xlu0 %v1380_v40, %s1646_s23 }
 0x2f8   :  { %v261_v41 = vpop.permute.xlu0 %260 }
 0x2f9   :  { %v263_v42 = vmul.f32 %v1378_v33, %v261_v41 }
 0x2fb   :  { %265 = vrot.lane.b32.xlu1 %v263_v42, %s1655_s16 }
 0x36d   :  { %v266_v43 = vpop.permute.xlu1 %265 }
 0x36e   :  { %v268_v44 = vsel %vm148_vm2, %v266_v43, %v146_v15 }
 0x36f   :  { %v269_v45 = vpack.c.bf16 %v268_v44, %v268_v44 }
 0x371   :  { %1298 = vmatmul.mubr.msk.bf16.vlgmr.msra.gmra.mrb[4].mxu0 %vm191_vm3, %v269_v45 }
 0x372   :  { %506 = vmatpush1.bf16.msra.mxu0 %v1763_v4  ;;  %537 = vmatprep.mubr.bf16.mxu0 %v1654_v1 }
 0x373   :  { %507 = vmatprep.subr.bf16.mxu0 %v1765_v5 }
 0x376   :  { %508 = vmatpush1.bf16.msra.mxu0 %v1769_v7 }
 0x377   :  { %509 = vmatprep.subr.bf16.mxu0 %v1772_v8 }
 0x37a   :  { %510 = vmatpush1.bf16.msra.mxu0 %v1775_v10 }
 0x37b   :  { %511 = vmatprep.subr.bf16.mxu0 %v1782_v12 }
 0x37e   :  { %512 = vmatpush1.bf16.msra.mxu0 %v1789_v13 }
 0x37f   :  { %733 = vmatprep.subr.bf16.mxu0 %v1761_v3 }
 0x444   :  { %v307_v47 = vpop.f32.mrb[4].mxu0 }
 0x445   :  { %v315_v48 = vrot.slane %v307_v47, 7  ;;  %v309_v49 = vpop.f32.mrb[5].mxu0 }
 0x446   :  { %v346_v50 = vadd.f32 %v1838_v46, %v309_v49  ;;  %v311_v51 = vpop.f32.mrb[6].mxu0 }
 0x447   :  { %v317_v52 = vadd.f32 %v315_v48, %v1817_v23  ;;  %v312_v53 = vpop.f32.mrb[7].mxu0 }
 0x448   :  { %1381 = vtanh.f32 %v346_v50  ;;  %v1300_v57 = vmul.f32 -1.442695, %v346_v50 }
 0x449   :  { %1383 = vtanh.f32 %v317_v52  ;;  %v1299_v58 = vmul.f32 -1.442695, %v317_v52 }
 0x44a   :  { %1385 = vpow2.f32 %v1300_v57 }
 0x44b   :  { %1387 = vpow2.f32 %v1299_v58 }
 0x452   :  { %v1382_v54 = vpop.eup %1381 }
 0x453   :  { %v1384_v55 = vpop.eup %1383  ;;  %360 = vrot.lane.b32.xlu0 %v1382_v54, %s1646_s23 }
 0x454   :  { %330 = vrot.lane.b32.xlu1 %v1384_v55, %s1646_s23  ;;  %v1386_v59 = vpop.eup %1385 }
 0x455   :  { %v1388_v60 = vpop.eup %1387  ;;  %v350_v61 = vadd.f32 1.0, %v1386_v59 }
 0x456   :  { %v321_v62 = vadd.f32 1.0, %v1388_v60 }
 0x457   :  { %355 = vrot.lane.b32.xlu0 %v143_v56, %s1655_s16  ;;  %1389 = vrcp.f32 %v350_v61 }
 0x458   :  { %1391 = vrcp.f32 %v321_v62 }
 0x461   :  { %v1390_v63 = vpop.eup %1389 }
 0x462   :  { %v1392_v6 = vpop.eup %1391 }
 0x463   :  { %v328_v19 = vmul.f32 %v1392_v6, %v326_v16 }
 0x4c5   :  { %v361_v2 = vpop.permute.xlu0 %360 }
 0x4c6   :  { %v363_v9 = vmul.f32 %v1390_v63, %v361_v2  ;;  %v331_v11 = vpop.permute.xlu1 %330 }
 0x4c7   :  { %v333_v14 = vmul.f32 %v1392_v6, %v331_v11 }
 0x4c8   :  { %365 = vrot.lane.b32.xlu1 %v363_v9, %s1655_s16 }
 0x4c9   :  { %335 = vrot.lane.b32.xlu0 %v333_v14, %s1655_s16  ;;  %v356_v15 = vpop.permute.xlu0 %355 }
 0x4ca   :  { %v358_v17 = vmul.f32 %v1390_v63, %v356_v15 }
 0x53a   :  { %v366_v18 = vpop.permute.xlu1 %365 }
 0x53b   :  { %v1850_v20 = vadd.f32 %v366_v18, %v358_v17  ;;  %v336_v21 = vpop.permute.xlu0 %335 }
 0x53c   :  { %v1852_v22 = vadd.f32 %v336_v21, %v328_v19 }
 0x53d   :  { %1393 = vtanh.f32 %v1850_v20 }
 0x53e   :  { %1395 = vtanh.f32 %v1852_v22  ;;  %v445_v58 = vrot.slane %v1852_v22, 7 }
 0x547   :  { %v1394_v24 = vpop.eup %1393 }
 0x548   :  { %v1396_v25 = vpop.eup %1395  ;;  %371 = vrot.lane.b32.xlu1 %v1394_v24, %s1646_s23 }
 0x549   :  { %341 = vrot.lane.b32.xlu0 %v1396_v25, %s1646_s23 }
 0x5ba   :  { %v372_v26 = vpop.permute.xlu1 %371 }
 0x5bb   :  { %v374_v27 = vmul.f32 %v1390_v63, %v372_v26  ;;  %v342_v28 = vpop.permute.xlu0 %341 }
 0x5bc   :  { %v344_v29 = vmul.f32 %v1392_v6, %v342_v28 }
 0x5bd   :  { %v380_v30 = vrot.slane %v374_v27, 7 }
 0x5be   :  { %376 = vrot.lane.b32.xlu1 %v344_v29, %s1655_s16 }
 0x5bf   :  { %381 = vrot.lane.b32.xlu0 %v380_v30, %s1646_s23 }
 0x630   :  { %v377_v31 = vpop.permute.xlu1 %376 }
 0x631   :  { %v382_v32 = vpop.permute.xlu0 %381 }
 0x632   :  { %v384_v33 = vsel %vm148_vm2, %v377_v31, %v382_v32 }
 0x633   :  { %v385_v34 = vpack.c.bf16 %v384_v33, %v384_v33 }
 0x635   :  { %v387_v35 = vshrl.u32 %v385_v34, 16 }
 0x637   :  { %1301 = vmatmul.mubr.msk.bf16.vlgmr.msra.gmra.mrb[4].mxu1 %vm191_vm3, %v387_v35 }
 0x638   :  { %621 = vmatpush1.bf16.msra.mxu1 %v1763_v4  ;;  %652 = vmatprep.mubr.bf16.mxu1 %v1654_v1 }
 0x639   :  { %622 = vmatprep.subr.bf16.mxu1 %v1765_v5 }
 0x63c   :  { %623 = vmatpush1.bf16.msra.mxu1 %v1769_v7 }
 0x63d   :  { %624 = vmatprep.subr.bf16.mxu1 %v1772_v8 }
 0x640   :  { %625 = vmatpush1.bf16.msra.mxu1 %v1775_v10 }
 0x641   :  { %626 = vmatprep.subr.bf16.mxu1 %v1782_v12 }
 0x644   :  { %627 = vmatpush1.bf16.msra.mxu1 %v1789_v13 }
 0x645   :  { %848 = vmatprep.subr.bf16.mxu1 %v1761_v3 }
 0x70a   :  { %v426_v36 = vpop.f32.mrb[4].mxu1 }
 0x70b   :  { %v434_v37 = vrot.slane %v426_v36, 6  ;;  %v428_v38 = vpop.f32.mrb[5].mxu1 }
 0x70c   :  { %v464_v39 = vadd.f32 %v428_v38, %v1838_v46  ;;  %v430_v40 = vpop.f32.mrb[6].mxu1 }
 0x70d   :  { %v436_v41 = vadd.f32 %v434_v37, %v1817_v23  ;;  %v431_v42 = vpop.f32.mrb[7].mxu1 }
 0x70e   :  { %1397 = vtanh.f32 %v464_v39  ;;  %v1303_v45 = vmul.f32 -1.442695, %v464_v39 }
 0x70f   :  { %1399 = vtanh.f32 %v436_v41  ;;  %v1302_v47 = vmul.f32 -1.442695, %v436_v41 }
 0x710   :  { %1401 = vpow2.f32 %v1303_v45 }
 0x711   :  { %1403 = vpow2.f32 %v1302_v47 }
 0x718   :  { %v1398_v43 = vpop.eup %1397 }
 0x719   :  { %v1400_v44 = vpop.eup %1399  ;;  %474 = vrot.lane.b32.xlu1 %v1398_v43, %s1646_s23 }
 0x71a   :  { %449 = vrot.lane.b32.xlu0 %v1400_v44, %s1646_s23  ;;  %v1402_v48 = vpop.eup %1401 }
 0x71b   :  { %v1404_v49 = vpop.eup %1403  ;;  %v468_v50 = vadd.f32 1.0, %v1402_v48 }
 0x71c   :  { %v440_v51 = vadd.f32 1.0, %v1404_v49 }
 0x71d   :  { %1405 = vrcp.f32 %v468_v50 }
 0x71e   :  { %1407 = vrcp.f32 %v440_v51 }
 0x727   :  { %v1406_v52 = vpop.eup %1405 }
 0x728   :  { %v1408_v54 = vpop.eup %1407  ;;  %v472_v59 = vmul.f32 %v1406_v52, %v1850_v20 }
 0x729   :  { %v447_v61 = vmul.f32 %v1408_v54, %v445_v58 }
 0x78b   :  { %v475_v53 = vpop.permute.xlu1 %474 }
 0x78c   :  { %v477_v55 = vmul.f32 %v1406_v52, %v475_v53  ;;  %v450_v56 = vpop.permute.xlu0 %449 }
 0x78d   :  { %v452_v57 = vmul.f32 %v1408_v54, %v450_v56 }
 0x78e   :  { %479 = vrot.lane.b32.xlu1 %v477_v55, %s1655_s16 }
 0x78f   :  { %454 = vrot.lane.b32.xlu0 %v452_v57, %s1655_s16 }
 0x800   :  { %v480_v60 = vpop.permute.xlu1 %479 }
 0x801   :  { %v1879_v62 = vadd.f32 %v480_v60, %v472_v59  ;;  %v455_v63 = vpop.permute.xlu0 %454 }
 0x802   :  { %v1881_v2 = vadd.f32 %v455_v63, %v447_v61 }
 0x803   :  { %1409 = vtanh.f32 %v1879_v62 }
 0x804   :  { %1411 = vtanh.f32 %v1881_v2  ;;  %v558_v45 = vrot.slane %v1881_v2, 7 }
 0x80d   :  { %v1410_v6 = vpop.eup %1409 }
 0x80e   :  { %v1412_v9 = vpop.eup %1411  ;;  %485 = vrot.lane.b32.xlu1 %v1410_v6, %s1646_s23 }
 0x80f   :  { %460 = vrot.lane.b32.xlu0 %v1412_v9, %s1646_s23 }
 0x880   :  { %v486_v11 = vpop.permute.xlu1 %485 }
 0x881   :  { %v488_v14 = vmul.f32 %v1406_v52, %v486_v11  ;;  %v461_v15 = vpop.permute.xlu0 %460 }
 0x882   :  { %v463_v16 = vmul.f32 %v1408_v54, %v461_v15 }
 0x883   :  { %v494_v17 = vrot.slane %v488_v14, 6 }
 0x884   :  { %490 = vrot.lane.b32.xlu1 %v463_v16, %s1655_s16 }
 0x885   :  { %495 = vrot.lane.b32.xlu0 %v494_v17, %s1646_s23 }
 0x8f6   :  { %v491_v18 = vpop.permute.xlu1 %490 }
 0x8f7   :  { %v496_v19 = vpop.permute.xlu0 %495 }
 0x8f8   :  { %v498_v20 = vsel %vm148_vm2, %v491_v18, %v496_v19 }
 0x8f9   :  { %v499_v21 = vpack.c.bf16 %v498_v20, %v498_v20 }
 0x8fb   :  { %v501_v22 = vrot.slane %v499_v21, 1 }
 0x8fd   :  { %1304 = vmatmul.mubr.msk.bf16.vlgmr.msra.gmra.mrb[8].mxu0 %vm191_vm3, %v501_v22 }
 0x8fe   :  { %734 = vmatpush1.bf16.msra.mxu0 %v1763_v4  ;;  %765 = vmatprep.mubr.bf16.mxu0 %v1654_v1 }
 0x8ff   :  { %735 = vmatprep.subr.bf16.mxu0 %v1765_v5 }
 0x902   :  { %736 = vmatpush1.bf16.msra.mxu0 %v1769_v7 }
 0x903   :  { %737 = vmatprep.subr.bf16.mxu0 %v1772_v8 }
 0x906   :  { %738 = vmatpush1.bf16.msra.mxu0 %v1775_v10 }
 0x907   :  { %739 = vmatprep.subr.bf16.mxu0 %v1782_v12 }
 0x90a   :  { %740 = vmatpush1.bf16.msra.mxu0 %v1789_v13 }
 0x90b   :  { %961 = vmatprep.subr.bf16.mxu0 %v1761_v3 }
 0x9d0   :  { %v539_v24 = vpop.f32.mrb[8].mxu0 }
 0x9d1   :  { %v547_v25 = vrot.slane %v539_v24, 5  ;;  %v541_v26 = vpop.f32.mrb[9].mxu0 }
 0x9d2   :  { %v577_v27 = vadd.f32 %v541_v26, %v1838_v46  ;;  %v543_v28 = vpop.f32.mrb[10].mxu0 }
 0x9d3   :  { %v549_v29 = vadd.f32 %v547_v25, %v1817_v23  ;;  %v544_v30 = vpop.f32.mrb[11].mxu0 }
 0x9d4   :  { %1413 = vtanh.f32 %v577_v27  ;;  %v1306_v33 = vmul.f32 -1.442695, %v577_v27 }
 0x9d5   :  { %1415 = vtanh.f32 %v549_v29  ;;  %v1305_v34 = vmul.f32 -1.442695, %v549_v29 }
 0x9d6   :  { %1417 = vpow2.f32 %v1306_v33 }
 0x9d7   :  { %1419 = vpow2.f32 %v1305_v34 }
 0x9de   :  { %v1414_v31 = vpop.eup %1413 }
 0x9df   :  { %v1416_v32 = vpop.eup %1415  ;;  %587 = vrot.lane.b32.xlu1 %v1414_v31, %s1646_s23 }
 0x9e0   :  { %562 = vrot.lane.b32.xlu0 %v1416_v32, %s1646_s23  ;;  %v1418_v35 = vpop.eup %1417 }
 0x9e1   :  { %v1420_v36 = vpop.eup %1419  ;;  %v581_v37 = vadd.f32 1.0, %v1418_v35 }
 0x9e2   :  { %v553_v38 = vadd.f32 1.0, %v1420_v36 }
 0x9e3   :  { %1421 = vrcp.f32 %v581_v37 }
 0x9e4   :  { %1423 = vrcp.f32 %v553_v38 }
 0x9ed   :  { %v1422_v39 = vpop.eup %1421 }
 0x9ee   :  { %v1424_v41 = vpop.eup %1423  ;;  %v585_v47 = vmul.f32 %v1422_v39, %v1879_v62 }
 0x9ef   :  { %v560_v49 = vmul.f32 %v1424_v41, %v558_v45 }
 0xa51   :  { %v588_v40 = vpop.permute.xlu1 %587 }
 0xa52   :  { %v590_v42 = vmul.f32 %v1422_v39, %v588_v40  ;;  %v563_v43 = vpop.permute.xlu0 %562 }
 0xa53   :  { %v565_v44 = vmul.f32 %v1424_v41, %v563_v43 }
 0xa54   :  { %592 = vrot.lane.b32.xlu1 %v590_v42, %s1655_s16 }
 0xa55   :  { %567 = vrot.lane.b32.xlu0 %v565_v44, %s1655_s16 }
 0xac6   :  { %v593_v48 = vpop.permute.xlu1 %592 }
 0xac7   :  { %v1908_v50 = vadd.f32 %v593_v48, %v585_v47  ;;  %v568_v51 = vpop.permute.xlu0 %567 }
 0xac8   :  { %v1910_v52 = vadd.f32 %v568_v51, %v560_v49 }
 0xac9   :  { %1425 = vtanh.f32 %v1908_v50 }
 0xaca   :  { %1427 = vtanh.f32 %v1910_v52  ;;  %v673_v33 = vrot.slane %v1910_v52, 7 }
 0xad3   :  { %v1426_v53 = vpop.eup %1425 }
 0xad4   :  { %v1428_v54 = vpop.eup %1427  ;;  %598 = vrot.lane.b32.xlu1 %v1426_v53, %s1646_s23 }
 0xad5   :  { %573 = vrot.lane.b32.xlu0 %v1428_v54, %s1646_s23 }
 0xb46   :  { %v599_v55 = vpop.permute.xlu1 %598 }
 0xb47   :  { %v601_v56 = vmul.f32 %v1422_v39, %v599_v55  ;;  %v574_v57 = vpop.permute.xlu0 %573 }
 0xb48   :  { %v576_v58 = vmul.f32 %v1424_v41, %v574_v57 }
 0xb49   :  { %v607_v59 = vrot.slane %v601_v56, 5 }
 0xb4a   :  { %603 = vrot.lane.b32.xlu1 %v576_v58, %s1655_s16 }
 0xb4b   :  { %608 = vrot.lane.b32.xlu0 %v607_v59, %s1646_s23 }
 0xbbc   :  { %v604_v60 = vpop.permute.xlu1 %603 }
 0xbbd   :  { %v609_v61 = vpop.permute.xlu0 %608 }
 0xbbe   :  { %v611_v62 = vsel %vm148_vm2, %v604_v60, %v609_v61 }
 0xbbf   :  { %v612_v63 = vpack.c.bf16 %v611_v62, %v611_v62 }
 0xbc1   :  { %v614_v2 = vshrl.u32 %v612_v63, 16 }
 0xbc3   :  { %v616_v6 = vrot.slane %v614_v2, 1 }
 0xbc5   :  { %1307 = vmatmul.mubr.msk.bf16.vlgmr.msra.gmra.mrb[8].mxu1 %vm191_vm3, %v616_v6 }
 0xbc6   :  { %849 = vmatpush1.bf16.msra.mxu1 %v1763_v4  ;;  %880 = vmatprep.mubr.bf16.mxu1 %v1654_v1 }
 0xbc7   :  { %850 = vmatprep.subr.bf16.mxu1 %v1765_v5 }
 0xbca   :  { %851 = vmatpush1.bf16.msra.mxu1 %v1769_v7 }
 0xbcb   :  { %852 = vmatprep.subr.bf16.mxu1 %v1772_v8 }
 0xbce   :  { %853 = vmatpush1.bf16.msra.mxu1 %v1775_v10 }
 0xbcf   :  { %854 = vmatprep.subr.bf16.mxu1 %v1782_v12 }
 0xbd2   :  { %855 = vmatpush1.bf16.msra.mxu1 %v1789_v13 }
 0xbd3   :  { %1076 = vmatprep.subr.bf16.mxu1 %v1761_v3 }
 0xc98   :  { %v654_v9 = vpop.f32.mrb[8].mxu1 }
 0xc99   :  { %v662_v11 = vrot.slane %v654_v9, 4  ;;  %v656_v14 = vpop.f32.mrb[9].mxu1 }
 0xc9a   :  { %v692_v15 = vadd.f32 %v656_v14, %v1838_v46  ;;  %v658_v16 = vpop.f32.mrb[10].mxu1 }
 0xc9b   :  { %v664_v17 = vadd.f32 %v662_v11, %v1817_v23  ;;  %v659_v18 = vpop.f32.mrb[11].mxu1 }
 0xc9c   :  { %1429 = vtanh.f32 %v692_v15  ;;  %v1309_v21 = vmul.f32 -1.442695, %v692_v15 }
 0xc9d   :  { %1431 = vtanh.f32 %v664_v17  ;;  %v1308_v22 = vmul.f32 -1.442695, %v664_v17 }
 0xc9e   :  { %1433 = vpow2.f32 %v1309_v21 }
 0xc9f   :  { %1435 = vpow2.f32 %v1308_v22 }
 0xca6   :  { %v1430_v19 = vpop.eup %1429 }
 0xca7   :  { %v1432_v20 = vpop.eup %1431  ;;  %702 = vrot.lane.b32.xlu1 %v1430_v19, %s1646_s23 }
 0xca8   :  { %677 = vrot.lane.b32.xlu0 %v1432_v20, %s1646_s23  ;;  %v1434_v3 = vpop.eup %1433 }
 0xca9   :  { %v1436_v24 = vpop.eup %1435  ;;  %v696_v25 = vadd.f32 1.0, %v1434_v3 }
 0xcaa   :  { %v668_v26 = vadd.f32 1.0, %v1436_v24 }
 0xcab   :  { %1437 = vrcp.f32 %v696_v25 }
 0xcac   :  { %1439 = vrcp.f32 %v668_v26 }
 0xcb5   :  { %v1438_v27 = vpop.eup %1437 }
 0xcb6   :  { %v1440_v29 = vpop.eup %1439  ;;  %v700_v34 = vmul.f32 %v1438_v27, %v1908_v50 }
 0xcb7   :  { %v675_v36 = vmul.f32 %v1440_v29, %v673_v33 }
 0xd19   :  { %v703_v28 = vpop.permute.xlu1 %702 }
 0xd1a   :  { %v705_v30 = vmul.f32 %v1438_v27, %v703_v28  ;;  %v678_v31 = vpop.permute.xlu0 %677 }
 0xd1b   :  { %v680_v32 = vmul.f32 %v1440_v29, %v678_v31 }
 0xd1c   :  { %707 = vrot.lane.b32.xlu1 %v705_v30, %s1655_s16 }
 0xd1d   :  { %682 = vrot.lane.b32.xlu0 %v680_v32, %s1655_s16 }
 0xd8e   :  { %v708_v35 = vpop.permute.xlu1 %707 }
 0xd8f   :  { %v1937_v37 = vadd.f32 %v708_v35, %v700_v34  ;;  %v683_v38 = vpop.permute.xlu0 %682 }
 0xd90   :  { %v1939_v39 = vadd.f32 %v683_v38, %v675_v36 }
 0xd91   :  { %1441 = vtanh.f32 %v1937_v37 }
 0xd92   :  { %1443 = vtanh.f32 %v1939_v39  ;;  %v786_v20 = vrot.slane %v1939_v39, 7 }
 0xd9b   :  { %v1442_v40 = vpop.eup %1441 }
 0xd9c   :  { %v1444_v41 = vpop.eup %1443  ;;  %713 = vrot.lane.b32.xlu1 %v1442_v40, %s1646_s23 }
 0xd9d   :  { %688 = vrot.lane.b32.xlu0 %v1444_v41, %s1646_s23 }
 0xe0e   :  { %v714_v42 = vpop.permute.xlu1 %713 }
 0xe0f   :  { %v716_v43 = vmul.f32 %v1438_v27, %v714_v42  ;;  %v689_v44 = vpop.permute.xlu0 %688 }
 0xe10   :  { %v691_v45 = vmul.f32 %v1440_v29, %v689_v44 }
 0xe11   :  { %v722_v47 = vrot.slane %v716_v43, 4 }
 0xe12   :  { %718 = vrot.lane.b32.xlu1 %v691_v45, %s1655_s16 }
 0xe13   :  { %723 = vrot.lane.b32.xlu0 %v722_v47, %s1646_s23 }
 0xe84   :  { %v719_v48 = vpop.permute.xlu1 %718 }
 0xe85   :  { %v724_v49 = vpop.permute.xlu0 %723 }
 0xe86   :  { %v726_v50 = vsel %vm148_vm2, %v719_v48, %v724_v49 }
 0xe87   :  { %v727_v51 = vpack.c.bf16 %v726_v50, %v726_v50 }
 0xe89   :  { %v729_v52 = vrot.slane %v727_v51, 2 }
 0xe8b   :  { %1310 = vmatmul.mubr.msk.bf16.vlgmr.msra.gmra.mrb[12].mxu0 %vm191_vm3, %v729_v52 }
 0xe8c   :  { %962 = vmatpush1.bf16.msra.mxu0 %v1763_v4  ;;  %993 = vmatprep.mubr.bf16.mxu0 %v1654_v1 }
 0xe8d   :  { %963 = vmatprep.subr.bf16.mxu0 %v1765_v5 }
 0xe90   :  { %964 = vmatpush1.bf16.msra.mxu0 %v1769_v7 }
 0xe91   :  { %965 = vmatprep.subr.bf16.mxu0 %v1772_v8 }
 0xe94   :  { %966 = vmatpush1.bf16.msra.mxu0 %v1775_v10 }
 0xe95   :  { %967 = vmatprep.subr.bf16.mxu0 %v1782_v12 }
 0xe98   :  { %968 = vmatpush1.bf16.msra.mxu0 %v1789_v13 }
 0xe99   :  { %1335 = vmatprep.subr.bf16.mxu0 %v1652_v0 }
 0xf5e   :  { %v767_v53 = vpop.f32.mrb[12].mxu0 }
 0xf5f   :  { %v775_v54 = vrot.slane %v767_v53, 3  ;;  %v769_v55 = vpop.f32.mrb[13].mxu0 }
 0xf60   :  { %v805_v56 = vadd.f32 %v769_v55, %v1838_v46  ;;  %v771_v57 = vpop.f32.mrb[14].mxu0 }
 0xf61   :  { %v777_v58 = vadd.f32 %v775_v54, %v1817_v23  ;;  %v772_v59 = vpop.f32.mrb[15].mxu0 }
 0xf62   :  { %1445 = vtanh.f32 %v805_v56  ;;  %v1312_v62 = vmul.f32 -1.442695, %v805_v56 }
 0xf63   :  { %1447 = vtanh.f32 %v777_v58  ;;  %v1311_v63 = vmul.f32 -1.442695, %v777_v58 }
 0xf64   :  { %1449 = vpow2.f32 %v1312_v62 }
 0xf65   :  { %1451 = vpow2.f32 %v1311_v63 }
 0xf6c   :  { %v1446_v60 = vpop.eup %1445 }
 0xf6d   :  { %v1448_v61 = vpop.eup %1447  ;;  %815 = vrot.lane.b32.xlu1 %v1446_v60, %s1646_s23 }
 0xf6e   :  { %790 = vrot.lane.b32.xlu0 %v1448_v61, %s1646_s23  ;;  %v1450_v2 = vpop.eup %1449 }
 0xf6f   :  { %v1452_v6 = vpop.eup %1451  ;;  %v809_v9 = vadd.f32 1.0, %v1450_v2 }
 0xf70   :  { %v781_v11 = vadd.f32 1.0, %v1452_v6 }
 0xf71   :  { %1453 = vrcp.f32 %v809_v9 }
 0xf72   :  { %1455 = vrcp.f32 %v781_v11 }
 0xf7b   :  { %v1454_v14 = vpop.eup %1453 }
 0xf7c   :  { %v1456_v16 = vpop.eup %1455  ;;  %v813_v21 = vmul.f32 %v1454_v14, %v1937_v37 }
 0xf7d   :  { %v788_v3 = vmul.f32 %v1456_v16, %v786_v20 }
 0xfdf   :  { %v816_v15 = vpop.permute.xlu1 %815 }
 0xfe0   :  { %v818_v17 = vmul.f32 %v1454_v14, %v816_v15  ;;  %v791_v18 = vpop.permute.xlu0 %790 }
 0xfe1   :  { %v793_v19 = vmul.f32 %v1456_v16, %v791_v18 }
 0xfe2   :  { %820 = vrot.lane.b32.xlu1 %v818_v17, %s1655_s16 }
 0xfe3   :  { %795 = vrot.lane.b32.xlu0 %v793_v19, %s1655_s16 }
0x1054   :  { %v821_v22 = vpop.permute.xlu1 %820 }
0x1055   :  { %v1966_v24 = vadd.f32 %v821_v22, %v813_v21  ;;  %v796_v25 = vpop.permute.xlu0 %795 }
0x1056   :  { %v1968_v26 = vadd.f32 %v796_v25, %v788_v3 }
0x1057   :  { %1457 = vtanh.f32 %v1966_v24 }
0x1058   :  { %1459 = vtanh.f32 %v1968_v26  ;;  %v901_v54 = vrot.slane %v1968_v26, 7 }
0x1061   :  { %v1458_v27 = vpop.eup %1457 }
0x1062   :  { %v1460_v28 = vpop.eup %1459  ;;  %826 = vrot.lane.b32.xlu1 %v1458_v27, %s1646_s23 }
0x1063   :  { %801 = vrot.lane.b32.xlu0 %v1460_v28, %s1646_s23 }
0x10d4   :  { %v827_v29 = vpop.permute.xlu1 %826 }
0x10d5   :  { %v829_v30 = vmul.f32 %v1454_v14, %v827_v29  ;;  %v802_v31 = vpop.permute.xlu0 %801 }
0x10d6   :  { %v804_v32 = vmul.f32 %v1456_v16, %v802_v31 }
0x10d7   :  { %v835_v33 = vrot.slane %v829_v30, 3 }
0x10d8   :  { %831 = vrot.lane.b32.xlu1 %v804_v32, %s1655_s16 }
0x10d9   :  { %836 = vrot.lane.b32.xlu0 %v835_v33, %s1646_s23 }
0x114a   :  { %v832_v34 = vpop.permute.xlu1 %831 }
0x114b   :  { %v837_v35 = vpop.permute.xlu0 %836 }
0x114c   :  { %v839_v36 = vsel %vm148_vm2, %v832_v34, %v837_v35 }
0x114d   :  { %v840_v37 = vpack.c.bf16 %v839_v36, %v839_v36 }
0x114f   :  { %v842_v38 = vshrl.u32 %v840_v37, 16 }
0x1151   :  { %v844_v39 = vrot.slane %v842_v38, 2 }
0x1153   :  { %1313 = vmatmul.mubr.msk.bf16.vlgmr.msra.gmra.mrb[12].mxu1 %vm191_vm3, %v844_v39 }
0x1154   :  { %1077 = vmatpush1.bf16.msra.mxu1 %v1763_v4  ;;  %1108 = vmatprep.mubr.bf16.mxu1 %v1654_v1 }
0x1155   :  { %1078 = vmatprep.subr.bf16.mxu1 %v1765_v5 }
0x1158   :  { %1079 = vmatpush1.bf16.msra.mxu1 %v1769_v7 }
0x1159   :  { %1080 = vmatprep.subr.bf16.mxu1 %v1772_v8 }
0x115c   :  { %1081 = vmatpush1.bf16.msra.mxu1 %v1775_v10 }
0x115d   :  { %1082 = vmatprep.subr.bf16.mxu1 %v1782_v12 }
0x1160   :  { %1083 = vmatpush1.bf16.msra.mxu1 %v1789_v13 }
0x1226   :  { %v882_v40 = vpop.f32.mrb[12].mxu1 }
0x1227   :  { %v890_v41 = vrot.slane %v882_v40, 2  ;;  %v884_v42 = vpop.f32.mrb[13].mxu1 }
0x1228   :  { %v920_v43 = vadd.f32 %v884_v42, %v1838_v46  ;;  %v886_v4 = vpop.f32.mrb[14].mxu1 }
0x1229   :  { %v892_v1 = vadd.f32 %v890_v41, %v1817_v23  ;;  %v887_v44 = vpop.f32.mrb[15].mxu1 }
0x122a   :  { %1461 = vtanh.f32 %v920_v43  ;;  %v1315_v8 = vmul.f32 -1.442695, %v920_v43 }
0x122b   :  { %1463 = vtanh.f32 %v892_v1  ;;  %v1314_v10 = vmul.f32 -1.442695, %v892_v1 }
0x122c   :  { %1465 = vpow2.f32 %v1315_v8 }
0x122d   :  { %1467 = vpow2.f32 %v1314_v10 }
0x1234   :  { %v1462_v5 = vpop.eup %1461 }
0x1235   :  { %v1464_v7 = vpop.eup %1463  ;;  %930 = vrot.lane.b32.xlu1 %v1462_v5, %s1646_s23 }
0x1236   :  { %905 = vrot.lane.b32.xlu0 %v1464_v7, %s1646_s23  ;;  %v1466_v12 = vpop.eup %1465 }
0x1237   :  { %v1468_v13 = vpop.eup %1467  ;;  %v924_v45 = vadd.f32 1.0, %v1466_v12 }
0x1238   :  { %v896_v47 = vadd.f32 1.0, %v1468_v13 }
0x1239   :  { %1469 = vrcp.f32 %v924_v45 }
0x123a   :  { %1471 = vrcp.f32 %v896_v47 }
0x1243   :  { %v1470_v48 = vpop.eup %1469 }
0x1244   :  { %v1472_v50 = vpop.eup %1471  ;;  %v928_v55 = vmul.f32 %v1470_v48, %v1966_v24 }
0x1245   :  { %v903_v57 = vmul.f32 %v1472_v50, %v901_v54 }
0x12a7   :  { %v931_v49 = vpop.permute.xlu1 %930 }
0x12a8   :  { %v933_v51 = vmul.f32 %v1470_v48, %v931_v49  ;;  %v906_v52 = vpop.permute.xlu0 %905 }
0x12a9   :  { %v908_v53 = vmul.f32 %v1472_v50, %v906_v52 }
0x12aa   :  { %935 = vrot.lane.b32.xlu1 %v933_v51, %s1655_s16 }
0x12ab   :  { %910 = vrot.lane.b32.xlu0 %v908_v53, %s1655_s16 }
0x131c   :  { %v936_v56 = vpop.permute.xlu1 %935 }
0x131d   :  { %v938_v58 = vadd.f32 %v936_v56, %v928_v55  ;;  %v911_v59 = vpop.permute.xlu0 %910 }
0x131e   :  { %v913_v60 = vadd.f32 %v911_v59, %v903_v57 }
0x131f   :  { %1473 = vtanh.f32 %v938_v58 }
0x1320   :  { %1475 = vtanh.f32 %v913_v60  ;;  %v1014_v39 = vrot.slane %v913_v60, 7 }
0x1329   :  { %v1474_v61 = vpop.eup %1473 }
0x132a   :  { %v1476_v62 = vpop.eup %1475  ;;  %941 = vrot.lane.b32.xlu1 %v1474_v61, %s1646_s23 }
0x132b   :  { %916 = vrot.lane.b32.xlu0 %v1476_v62, %s1646_s23 }
0x139c   :  { %v942_v63 = vpop.permute.xlu1 %941 }
0x139d   :  { %v944_v2 = vmul.f32 %v1470_v48, %v942_v63  ;;  %v917_v6 = vpop.permute.xlu0 %916 }
0x139e   :  { %v919_v9 = vmul.f32 %v1472_v50, %v917_v6 }
0x139f   :  { %v950_v11 = vrot.slane %v944_v2, 2 }
0x13a0   :  { %946 = vrot.lane.b32.xlu1 %v919_v9, %s1655_s16 }
0x13a1   :  { %951 = vrot.lane.b32.xlu0 %v950_v11, %s1646_s23  ;;  %v1372_v11 = vld [vmem:[%s2088_s6 + $0x8] sm:$0xff]  }
0x1412   :  { %v947_v14 = vpop.permute.xlu1 %946 }
0x1413   :  { %v952_v15 = vpop.permute.xlu0 %951 }
0x1414   :  { %v954_v16 = vsel %vm148_vm2, %v947_v14, %v952_v15 }
0x1415   :  { %v955_v17 = vpack.c.bf16 %v954_v16, %v954_v16 }
0x1417   :  { %v957_v18 = vrot.slane %v955_v17, 3 }
0x1419   :  { %1316 = vmatmul.mubr.msk.bf16.vlgmr.msra.gmra.mrb[16].mxu0 %vm191_vm3, %v957_v18 }
0x141a   :  { %1339 = vmatprep.mubr.msk.bf16.mxu0 %vm1653_vm0, %v1652_v0 }
0x14ec   :  { %v995_v19 = vpop.f32.mrb[16].mxu0 }
0x14ed   :  { %v1003_v20 = vrot.slane %v995_v19, 1  ;;  %v997_v21 = vpop.f32.mrb[17].mxu0  ;;  %v1223_v19 = vlaneseq }
0x14ee   :  { %v1033_v22 = vadd.f32 %v997_v21, %v1838_v46  ;;  %v999_v3 = vpop.f32.mrb[18].mxu0  ;;  %v1164_v21 = vld [vmem:[%s2089_s7] sm:$0x1]  ;;  %s1657_s7 = smov [#allocation9]  }
0x14ef   :  { %v1005_v24 = vadd.f32 %v1003_v20, %v1817_v23  ;;  %v1000_v25 = vpop.f32.mrb[19].mxu0  ;;  %v1224_v20 = vand.u32 127, %v1223_v19 }
0x14f0   :  { %1477 = vtanh.f32 %v1033_v22  ;;  %v1318_v28 = vmul.f32 -1.442695, %v1033_v22 }
0x14f1   :  { %1479 = vtanh.f32 %v1005_v24  ;;  %v1317_v29 = vmul.f32 -1.442695, %v1005_v24  ;;  %vm1225_vm5 = vcmp.lt.s32.totalorder %v1224_v20, 48 }
0x14f2   :  { %1481 = vpow2.f32 %v1318_v28 }
0x14f3   :  { %1483 = vpow2.f32 %v1317_v29 }
0x14fa   :  { %v1478_v26 = vpop.eup %1477 }
0x14fb   :  { %v1480_v27 = vpop.eup %1479  ;;  %1043 = vrot.lane.b32.xlu1 %v1478_v26, %s1646_s23 }
0x14fc   :  { %1018 = vrot.lane.b32.xlu0 %v1480_v27, %s1646_s23  ;;  %v1482_v30 = vpop.eup %1481 }
0x14fd   :  { %v1484_v31 = vpop.eup %1483  ;;  %v1037_v32 = vadd.f32 1.0, %v1482_v30 }
0x14fe   :  { %v1009_v33 = vadd.f32 1.0, %v1484_v31 }
0x14ff   :  { %1485 = vrcp.f32 %v1037_v32 }
0x1500   :  { %1487 = vrcp.f32 %v1009_v33 }
0x1509   :  { %v1486_v23 = vpop.eup %1485 }
0x150a   :  { %v1488_v35 = vpop.eup %1487  ;;  %v1041_v40 = vmul.f32 %v1486_v23, %v938_v58 }
0x150b   :  { %v1016_v42 = vmul.f32 %v1488_v35, %v1014_v39 }
0x156d   :  { %v1044_v34 = vpop.permute.xlu1 %1043 }
0x156e   :  { %v1046_v36 = vmul.f32 %v1486_v23, %v1044_v34  ;;  %v1019_v37 = vpop.permute.xlu0 %1018 }
0x156f   :  { %v1021_v38 = vmul.f32 %v1488_v35, %v1019_v37 }
0x1570   :  { %1048 = vrot.lane.b32.xlu1 %v1046_v36, %s1655_s16 }
0x1571   :  { %1023 = vrot.lane.b32.xlu0 %v1021_v38, %s1655_s16 }
0x15e2   :  { %v1049_v41 = vpop.permute.xlu1 %1048 }
0x15e3   :  { %v1051_v43 = vadd.f32 %v1049_v41, %v1041_v40  ;;  %v1024_v4 = vpop.permute.xlu0 %1023 }
0x15e4   :  { %v2008_v1 = vadd.f32 %v1024_v4, %v1016_v42 }
0x15e5   :  { %1489 = vtanh.f32 %v1051_v43 }
0x15e6   :  { %1491 = vtanh.f32 %v2008_v1 }
0x15ef   :  { %v1490_v44 = vpop.eup %1489 }
0x15f0   :  { %v1492_v5 = vpop.eup %1491  ;;  %1054 = vrot.lane.b32.xlu1 %v1490_v44, %s1646_s23 }
0x15f1   :  { %1029 = vrot.lane.b32.xlu0 %v1492_v5, %s1646_s23 }
0x1662   :  { %v1055_v7 = vpop.permute.xlu1 %1054 }
0x1663   :  { %v1057_v8 = vmul.f32 %v1486_v23, %v1055_v7  ;;  %v1030_v10 = vpop.permute.xlu0 %1029 }
0x1664   :  { %v1032_v12 = vmul.f32 %v1488_v35, %v1030_v10 }
0x1665   :  { %v1063_v13 = vrot.slane %v1057_v8, 1 }
0x1666   :  { %1059 = vrot.lane.b32.xlu1 %v1032_v12, %s1655_s16 }
0x1667   :  { %1064 = vrot.lane.b32.xlu0 %v1063_v13, %s1646_s23 }
0x16d8   :  { %v1060_v45 = vpop.permute.xlu1 %1059 }
0x16d9   :  { %1142 = vst.msk [vmem:[#allocation9 - $0x7] sm:$0x80] %vm1141_vm4, %v1060_v45  ;;  %v1065_v47 = vpop.permute.xlu0 %1064 }
0x16da   :  { %v1067_v48 = vsel %vm148_vm2, %v1060_v45, %v1065_v47 }
0x16db   :  { %v1068_v49 = vpack.c.bf16 %v1067_v48, %v1067_v48 }
0x16dd   :  { %v1070_v50 = vshrl.u32 %v1068_v49, 16 }
0x16df   :  { %v1072_v51 = vrot.slane %v1070_v50, 3 }
0x16e1   :  { %1319 = vmatmul.mubr.msk.bf16.vlgmr.msra.gmra.mrb[16].mxu1 %vm191_vm3, %v1072_v51 }
0x17b4   :  { %v1110_v52 = vpop.f32.mrb[16].mxu1 }
0x17b5   :  { %v1111_v53 = vpop.f32.mrb[17].mxu1 }
0x17b6   :  { %v1116_v54 = vadd.f32 %v1111_v53, %v1838_v46  ;;  %v1113_v55 = vpop.f32.mrb[18].mxu1  ;;  %v1371_v46 = vld [vmem:[%s2088_s6] sm:$0xff]   ;;  %s1656_s6 = smov 96  }
0x17b7   :  { %v1114_v56 = vpop.f32.mrb[19].mxu1  ;;  %1336 = vmatpush3.bf16.msra.mxu0 %v1371_v46 }
0x17b8   :  { %1493 = vtanh.f32 %v1116_v54  ;;  %v1320_v58 = vmul.f32 -1.442695, %v1116_v54  ;;  %1337 = vmatprep.subr.bf16.mxu0 %v1652_v0 }
0x17ba   :  { %1495 = vpow2.f32 %v1320_v58 }
0x17bb   :  { %1338 = vmatpush3.bf16.msra.mxu0 %v1372_v11 }
0x17c2   :  { %v1494_v57 = vpop.eup %1493 }
0x17c3   :  { %1126 = vrot.lane.b32.xlu1 %v1494_v57, %s1646_s23 }
0x17c4   :  { %v1496_v59 = vpop.eup %1495 }
0x17c5   :  { %v1120_v60 = vadd.f32 1.0, %v1496_v59 }
0x17c7   :  { %1497 = vrcp.f32 %v1120_v60 }
0x17d1   :  { %v1498_v61 = vpop.eup %1497 }
0x17d2   :  { %v1124_v2 = vmul.f32 %v1498_v61, %v1051_v43 }
0x1835   :  { %v1127_v62 = vpop.permute.xlu1 %1126 }
0x1836   :  { %v1129_v63 = vmul.f32 %v1498_v61, %v1127_v62 }
0x1838   :  { %1131 = vrot.lane.b32.xlu0 %v1129_v63, %s1655_s16 }
0x18aa   :  { %v1132_v6 = vpop.permute.xlu0 %1131 }
0x18ab   :  { %v1134_v9 = vadd.f32 %v1132_v6, %v1124_v2 }
0x18ad   :  { %1499 = vtanh.f32 %v1134_v9 }
0x18b7   :  { %v1500_v14 = vpop.eup %1499 }
0x18b8   :  { %1137 = vrot.lane.b32.xlu1 %v1500_v14, %s1646_s23  ;;  %s1258_s23 = sshll.u32 %s1657_s7, 4  ;;  %s1259_s23 = int_to_ptr.vmem [resolvable:$true] %s1258_s23 }
0x18b9   :  { %s1571_s0 = scalar_lea.vmem %s1259_s23, 32  ;;  %p1576_p11 = scmp.lt.s32.totalorder %s1259_s23, %s1259_s23 }
0x18ba   :  { %p1572_p10 = scmp.ne.s32.totalorder %s1259_s23, %s1571_s0  ;;  %p1577_p12 = scmp.lt.s32.totalorder %s1571_s0, %s1571_s0 }
0x18bc   :  { %p1578_p13 = por %p1577_p12, %p1576_p11 }
0x18be   :  { %p1579_p0 = pnand %p1578_p13, %p1572_p10 }
0x192a   :  { %v1138_v15 = vpop.permute.xlu1 %1137 }
0x192b   :  { %v1140_v16 = vmul.f32 %v1498_v61, %v1138_v15 }
0x192d   :  { %v1159_v17 = vpack.c.bf16 %v1140_v16, %v1140_v16 }
0x192f   :  { %1166 = vrot.lane.b32.xlu0 %v1159_v17, %s1655_s16 }
0x19a1   :  { %v1167_v18 = vpop.permute.xlu0 %1166 }
0x19a2   :  { %1340 = vmatmul.mubr.msk.bf16.vlgmr.msra.gmra.mrb[20].mxu0 %vm148_vm2, %v1167_v18 }
0x1a75   :  { %v1217_v22 = vpop.f32.mrb[20].mxu0 }
0x1a76   :  { %v1218_v0 = vadd.f32 %v1217_v22, %v1164_v21  ;;  %v1341_v3 = vpop.f32.mrb[21].mxu0 }
0x1a77   :  { %v1220_v24 = vpop.f32.mrb[22].mxu0 }
0x1a78   :  { %v2034_v25 = vsel %vm1225_vm5, %v1218_v0, -inf  ;;  %v1342_v26 = vpop.f32.mrb[23].mxu0 }
0x1a79   :  { %v1228_v27 = vsel %vm1227_vm6, %v2034_v25, -inf }
0x1a7a   :  { %1229 = vmax.xlane.f32.xlu1 %v1228_v27 }
0x1a8b   :  { %1144 = vrot.lane.b32.xlu1 %v2008_v1, %s1656_s6 }
0x1a8f   :  { %1155 = vrot.lane.b32.xlu1 %v1134_v9, %s1656_s6 }
0x1b07   :  { %v1230_v28 = vpop.xlane.xlu1 %1229 }
0x1b08   :  { %v1231_v29 = vsub.f32 %v2034_v25, %v1230_v28 }
0x1b0a   :  { %v1232_v30 = vmul.f32 1.442695, %v1231_v29 }
0x1b0b   :  { %v1145_v31 = vpop.permute.xlu1 %1144 }
0x1b0c   :  { %1501 = vpow2.f32 %v1232_v30  ;;  %1147 = vst.msk [vmem:[#allocation11 - $0x7] sm:$0x80] %vm1141_vm4, %v1145_v31 }
0x1b0f   :  { %v1156_v32 = vpop.permute.xlu1 %1155 }
0x1b10   :  { %1158 = vst.msk [vmem:[#allocation11 + $0x1] sm:$0x1] %vm1152_vm7, %v1156_v32 }
0x1b16   :  { %v1502_v33 = vpop.eup %1501 }
0x1b17   :  { %v1234_v23 = vsel %vm1227_vm6, %v1502_v33, 0.0 }
0x1b18   :  { %1235 = vadd.xlane.f32.xlu0 %v1234_v23 }
0x1b2e   :  { %1149 = vrot.lane.b32.xlu0 %v1140_v16, %s1655_s16 }
0x1ba5   :  { %v1236_v34 = vpop.xlane.xlu0 %1235 }
0x1ba6   :  { %1503 = vlog2.f32 %v1236_v34 }
0x1ba9   :  { %v1150_v35 = vpop.permute.xlu0 %1149 }
0x1baa   :  { %1153 = vst.msk [vmem:[#allocation9 + $0x1] sm:$0x1] %vm1152_vm7, %v1150_v35 }
0x1bab   :  { %1582 = shalt.err (!%p1579_p0)
}
0x1bac   :  { %s1583_s12 = scalar_lea.hbm %s2091_s9, 32 }
0x1bad   :  { %p1584_p1 = scmp.ne.s32.totalorder %s2091_s9, %s1583_s12  ;;  %p1587_p2 = scmp.lt.u32.totalorder %s1583_s12, %s2091_s9 }
0x1baf   :  { %p1589_p3 = pnand %p1587_p2, %p1584_p1 }
0x1bb1   :  { %1592 = shalt.err (!%p1589_p3)
}
0x1bb2   :  { %1261 = dma.vmem_to_hbm [thread:$0]  %s1259_s23, 32, %s2091_s9, [#allocation10]  }
0x1bb3   :  { %s1593_s18 = scalar_lea.vmem %s1269_s29, 32  ;;  %p1598_p5 = scmp.lt.s32.totalorder %s1269_s29, %s1269_s29 }
0x1bb4   :  { %p1594_p4 = scmp.ne.s32.totalorder %s1269_s29, %s1593_s18  ;;  %p1599_p6 = scmp.lt.s32.totalorder %s1593_s18, %s1593_s18 }
0x1bb6   :  { %p1600_p7 = por %p1599_p6, %p1598_p5 }
0x1bb8   :  { %p1601_p8 = pnand %p1600_p7, %p1594_p4 }
0x1bba   :  { %1604 = shalt.err (!%p1601_p8)
}
0x1bbb   :  { %s1605_s14 = scalar_lea.hbm %s2092_s10, 32 }
0x1bbc   :  { %p1606_p9 = scmp.ne.s32.totalorder %s2092_s10, %s1605_s14  ;;  %p1609_p10 = scmp.lt.u32.totalorder %s1605_s14, %s2092_s10 }
0x1bbe   :  { %p1611_p11 = pnand %p1609_p10, %p1606_p9 }
0x1bc0   :  { %1614 = shalt.err (!%p1611_p11)
}
0x1bc1   :  { %1271 = dma.vmem_to_hbm [thread:$0]  %s1269_s29, 32, %s2092_s10, [#allocation10]   ;;  %v1504_v36 = vpop.eup %1503 }
0x1bc2   :  { %v1238_v37 = vmul.f32 0.6931472, %v1504_v36  ;;  %s1659_s22 = smov [#allocation8]  }
0x1bc3   :  { %s1248_s24 = sshll.u32 %s1659_s22, 4  ;;  %s1249_s24 = int_to_ptr.vmem [resolvable:$true] %s1248_s24 }
0x1bc4   :  { %v1239_v38 = vadd.f32 %v1238_v37, %v1230_v28  ;;  %s1615_s25 = scalar_lea.vmem %s1249_s24, 16  ;;  %s1619_s26 = scalar_lea.vmem %s1249_s24, 32 }
0x1bc5   :  { %p1616_p12 = scmp.ne.s32.totalorder %s1249_s24, %s1615_s25  ;;  %p1620_p13 = scmp.lt.s32.totalorder %s1249_s24, %s1249_s24 }
0x1bc6   :  { %v1240_v39 = vsub.f32 %v2034_v25, %v1239_v38  ;;  %p1621_p0 = scmp.lt.s32.totalorder %s1619_s26, %s1615_s25 }
0x1bc8   :  { %1241 = vst [vmem:[#allocation8] sm:$0x1] %v1240_v39  ;;  %p1622_p1 = por %p1621_p0, %p1620_p13 }
0x1bca   :  { %p1623_p2 = pnand %p1622_p1, %p1616_p12 }
0x1bcc   :  { %1626 = shalt.err (!%p1623_p2)
}
0x1bcd   :  { %s1627_s10 = scalar_lea.hbm %s2090_s8, 16 }
0x1bce   :  { %p1628_p3 = scmp.ne.s32.totalorder %s2090_s8, %s1627_s10  ;;  %p1631_p4 = scmp.lt.u32.totalorder %s1627_s10, %s2090_s8 }
0x1bd0   :  { %p1633_p5 = pnand %p1631_p4, %p1628_p3 }
0x1bd2   :  { %1636 = shalt.err (!%p1633_p5)
}
0x1bd3   :  { %1251 = dma.vmem_to_hbm [thread:$0]  %s1249_s24, 16, %s2090_s8, [#allocation4]  }
0x1bd4   :  { %1641 = dma.done.wait [#allocation4], 16  }
0x1bd5   :  { %1642 = vsyncadd [#allocation4], 4294967280 }
0x1bd6   :  { %1643 = dma.done.wait [#allocation10], 64  }
0x1bd7   :  { %1644 = vsyncadd [#allocation10], 4294967232 }
0x1bd8   :  { %1281 = vsyncpa [#allocation3], 1 }
0x1bd9   :  { %1282 = vsyncpa [#allocation6], 1 }
0x1bda   :  { %1283 = vsyncpa [#allocation4], 1 }
0x1bdb   :  { %1284 = vsyncpa [#allocation10], 1 }

</bundles_post_ra>
